<compile_context>
chip_gen: v7x
topology: tpu7x:2x2x1
jax: 0.10.0
libtpu: 0.0.40
codegen_flags: <defaults>
</compile_context>

<pallas_src>
import functools
from collections import namedtuple

import jax
import jax.numpy as jnp
import numpy as np
from jax.experimental import pallas as pl
from jax.experimental.pallas import tpu as pltpu

LANE = 128
NEG_INF = -1e30


def _round_up(x, m):
    return ((x + m - 1) // m) * m


def _vmem_limit():
    """Generation-aware VMEM budget (~75% of physical: 96MiB v5e/v6e, 48MiB v7x)."""
    cap = 64 * 1024 * 1024
    try:
        info = pltpu.get_tpu_info()
        cap = int(getattr(info, "vmem_capacity_bytes", cap)) or cap
    except Exception:
        pass
    return int(cap * 3 // 4)


def _row_tile(n, bytes_per_row, budget):
    """Largest 128-multiple row tile dividing n that fits `budget`, preferring
    >= 2 grid steps so the 'parallel' axis can be split across v7x's 2 cores."""
    cands = [t for t in (1024, 512, 384, 256, 128)
             if n % t == 0 and t * bytes_per_row <= budget]
    two_step = [t for t in cands if t <= n // 2]
    if two_step:
        return two_step[0]
    if cands:
        return cands[0]
    return 128 if n % LANE == 0 else n


# ----------------------------------------------------------------------------- #
# Lane-dense head-major feature layout: actual output feature (head h, j) lives
# at padded column h * fout_pad + j (fout_pad = round_up(fout, 128)).
# ----------------------------------------------------------------------------- #
Layout = namedtuple("Layout", ["heads", "fout", "fout_pad"])


def layout_width(lay):
    return lay.heads * lay.fout_pad


def layout_positions(lay):
    pos = np.arange(lay.heads * lay.fout)
    return (pos // lay.fout) * lay.fout_pad + (pos % lay.fout)


# ----------------------------------------------------------------------------- #
# Fully-fused small-graph kernel: 3 GAT layers + gmp + fc_g1 + ReLU + fc_g2 +
# ReLU in ONE pallas_call (everything resident in VMEM).  Removes 6 kernel
# launches and all intermediate HBM round-trips — the dominant cost at small N.
# ----------------------------------------------------------------------------- #
def fused_gatnet_kernel(x_ref, adjb_ref, bmask_ref,
                        w1_ref, adp1_ref, asp1_ref, b1_ref,
                        w2_ref, adp2_ref, asp2_ref, b2_ref,
                        w3_ref, adp3_ref, asp3_ref, b3_ref,
                        fc1w_ref, fc1b_ref, fc2w_ref, fc2b_ref,
                        o_ref, *, head_counts, fout_pads, num_graphs):
    adj_bias = adjb_ref[...].astype(jnp.float32)   # additive -1e30 mask, hoisted

    def gat(x_b, w_ref, adp_ref, asp_ref, bias_ref, heads, fout_pad):
        h = jnp.dot(x_b, w_ref[...], preferred_element_type=jnp.float32)
        h_b = h.astype(jnp.bfloat16)
        a_d = jnp.dot(h_b, adp_ref[...], preferred_element_type=jnp.float32)
        a_sT = jax.lax.dot_general(asp_ref[...], h_b,
                                   dimension_numbers=(((1,), (1,)), ((), ())),
                                   preferred_element_type=jnp.float32)
        outs = []
        for hd in range(heads):
            logits = a_d[:, hd:hd + 1] + a_sT[hd:hd + 1, :]
            logits = jnp.maximum(logits, 0.2 * logits)       # LeakyReLU(0.2)
            masked = logits + adj_bias                       # additive mask
            m = jnp.max(masked, axis=-1, keepdims=True)
            e = jnp.exp(masked - m)                          # non-neighbours -> 0
            denom = jnp.sum(e, axis=-1, keepdims=True)
            attn = (e * pl.reciprocal(denom, approx=True)).astype(jnp.bfloat16)
            outs.append(jnp.dot(attn, h_b[:, hd * fout_pad:(hd + 1) * fout_pad],
                                preferred_element_type=jnp.float32))
        out = outs[0] if heads == 1 else jnp.concatenate(outs, axis=-1)
        # bias + fused ReLU; kept bf16 for the next layer's MXU operand.
        return jnp.maximum(out + bias_ref[...], 0.0).astype(jnp.bfloat16)

    h = gat(x_ref[...], w1_ref, adp1_ref, asp1_ref, b1_ref,
            head_counts[0], fout_pads[0])
    h = gat(h, w2_ref, adp2_ref, asp2_ref, b2_ref, head_counts[1], fout_pads[1])
    h = gat(h, w3_ref, adp3_ref, asp3_ref, b3_ref, head_counts[2], fout_pads[2])

    # gmp (global max pool per graph) + fc_g1 + ReLU + fc_g2 + ReLU.
    hf = h.astype(jnp.float32)
    mask = bmask_ref[...]
    rows = []
    for g in range(num_graphs):
        vals = jnp.where(mask[:, g:g + 1] > 0, hf, NEG_INF)
        rows.append(jnp.max(vals, axis=0, keepdims=True))
    pooled = rows[0] if num_graphs == 1 else jnp.concatenate(rows, axis=0)

    y = jnp.dot(pooled.astype(jnp.bfloat16), fc1w_ref[...],
                preferred_element_type=jnp.float32) + fc1b_ref[...]
    y = jnp.maximum(y, 0.0)
    # TODO(synk): nn.Dropout / GATConv attention dropout — eval-mode identity.
    y = jnp.dot(y.astype(jnp.bfloat16), fc2w_ref[...],
                preferred_element_type=jnp.float32) + fc2b_ref[...]
    o_ref[...] = jnp.maximum(y, 0.0)


# ----------------------------------------------------------------------------- #
# Tiled path, pass 1: projection h = x @ W (bf16 MXU, f32 accumulate).
# ----------------------------------------------------------------------------- #
def gat_project_kernel(x_ref, w_ref, h_ref):
    h_ref[...] = jnp.dot(x_ref[...], w_ref[...],
                         preferred_element_type=jnp.float32).astype(jnp.bfloat16)


# ----------------------------------------------------------------------------- #
# Tiled path, pass 2: masked-softmax attention + aggregation + bias + ReLU,
# gridded over destination-row tiles ("parallel" -> megacore).  Attention
# coefficients are recomputed from the resident h (tiny matmuls).
# ----------------------------------------------------------------------------- #
def gat_attend_kernel(adjb_ref, hdst_ref, hall_ref, adp_ref, asp_ref, b_ref,
                      o_ref, *, heads, fout_pad):
    adj_bias = adjb_ref[...].astype(jnp.float32)     # [tile_d, N], hoisted
    h_dst = hdst_ref[...]                            # [tile_d, H*fp] bf16
    h_all = hall_ref[...]                            # [N, H*fp]     bf16 (resident)
    a_d = jnp.dot(h_dst, adp_ref[...], preferred_element_type=jnp.float32)
    a_sT = jax.lax.dot_general(asp_ref[...], h_all,
                               dimension_numbers=(((1,), (1,)), ((), ())),
                               preferred_element_type=jnp.float32)   # [heads, N]
    outs = []
    for hd in range(heads):
        logits = a_d[:, hd:hd + 1] + a_sT[hd:hd + 1, :]
        logits = jnp.maximum(logits, 0.2 * logits)               # LeakyReLU(0.2)
        masked = logits + adj_bias
        m = jnp.max(masked, axis=-1, keepdims=True)
        e = jnp.exp(masked - m)
        denom = jnp.sum(e, axis=-1, keepdims=True)
        attn = (e * pl.reciprocal(denom, approx=True)).astype(jnp.bfloat16)
        outs.append(jnp.dot(attn, h_all[:, hd * fout_pad:(hd + 1) * fout_pad],
                            preferred_element_type=jnp.float32))
    out = outs[0] if heads == 1 else jnp.concatenate(outs, axis=-1)
    o_ref[...] = jnp.maximum(out + b_ref[...], 0.0).astype(o_ref.dtype)


def gat_layer_tiled(x, adj_bias, p, *, heads, fout_pad, vmem_limit):
    n, in_w = x.shape
    out_w = heads * fout_pad

    # ---- pass 1: projection --------------------------------------------------
    per_row1 = 2 * (in_w * 2 + out_w * 2)            # double-buffered bf16 tiles
    fixed1 = in_w * out_w * 2                        # resident W (bf16)
    tile_n = _row_tile(n, per_row1, max(vmem_limit // 2 - fixed1, 1))
    h = pl.pallas_call(
        gat_project_kernel,
        grid=(n // tile_n,),
        in_specs=[pl.BlockSpec((tile_n, in_w), lambda i: (i, 0)),
                  pl.BlockSpec((in_w, out_w), lambda i: (0, 0))],
        out_specs=pl.BlockSpec((tile_n, out_w), lambda i: (i, 0)),
        out_shape=jax.ShapeDtypeStruct((n, out_w), jnp.bfloat16),
        compiler_params=pltpu.CompilerParams(
            dimension_semantics=("parallel",), vmem_limit_bytes=vmem_limit),
    )(x, p["w"])

    # ---- pass 2: attention over destination-row tiles -------------------------
    # per dst row: bf16 adj tile (x2 buffers) + ~4 f32 [row, N] temps + bf16
    # h_dst / out tiles (x2 buffers each); fixed: resident h_all.
    per_row2 = 4 * n + 16 * n + 8 * out_w
    fixed2 = n * out_w * 2 * 2
    tile_d = _row_tile(n, per_row2, max(vmem_limit // 2 - fixed2, 1))
    out = pl.pallas_call(
        functools.partial(gat_attend_kernel, heads=heads, fout_pad=fout_pad),
        grid=(n // tile_d,),
        in_specs=[
            pl.BlockSpec((tile_d, n), lambda i: (i, 0)),        # adj_bias rows
            pl.BlockSpec((tile_d, out_w), lambda i: (i, 0)),    # h (dst tile)
            pl.BlockSpec((n, out_w), lambda i: (0, 0)),         # h (all, resident)
            pl.BlockSpec((out_w, heads), lambda i: (0, 0)),     # a_dst packed
            pl.BlockSpec((heads, out_w), lambda i: (0, 0)),     # a_src packed^T
            pl.BlockSpec((1, out_w), lambda i: (0, 0)),         # bias
        ],
        out_specs=pl.BlockSpec((tile_d, out_w), lambda i: (i, 0)),
        out_shape=jax.ShapeDtypeStruct((n, out_w), jnp.bfloat16),
        compiler_params=pltpu.CompilerParams(
            dimension_semantics=("parallel",), vmem_limit_bytes=vmem_limit),
    )(adj_bias, h, h, p["a_dst"], p["a_src_t"], p["bias"])
    return out


# ----------------------------------------------------------------------------- #
# Tiled-path tail: gmp + fc_g1 + ReLU + (dropout: identity) + fc_g2 + ReLU.
# ----------------------------------------------------------------------------- #
def pool_mlp_kernel(x_ref, mask_ref, w1_ref, b1_ref, w2_ref, b2_ref, o_ref, *,
                    num_graphs):
    x = x_ref[...].astype(jnp.float32)
    mask = mask_ref[...]
    rows = []
    for g in range(num_graphs):
        vals = jnp.where(mask[:, g:g + 1] > 0, x, NEG_INF)
        rows.append(jnp.max(vals, axis=0, keepdims=True))
    pooled = rows[0] if num_graphs == 1 else jnp.concatenate(rows, axis=0)
    y = jnp.dot(pooled.astype(jnp.bfloat16), w1_ref[...],
                preferred_element_type=jnp.float32) + b1_ref[...]
    y = jnp.maximum(y, 0.0)
    # TODO(synk): nn.Dropout — eval-mode identity (no-op here).
    y = jnp.dot(y.astype(jnp.bfloat16), w2_ref[...],
                preferred_element_type=jnp.float32) + b2_ref[...]
    o_ref[...] = jnp.maximum(y, 0.0)


def pool_mlp(x, batch_1hot, w1, b1, w2, b2, *, vmem_limit):
    g = batch_1hot.shape[1]
    out_dim = w2.shape[1]
    return pl.pallas_call(
        functools.partial(pool_mlp_kernel, num_graphs=g),
        out_shape=jax.ShapeDtypeStruct((g, out_dim), jnp.float32),
        in_specs=[pl.BlockSpec(memory_space=pltpu.MemorySpace.VMEM)] * 6,
        out_specs=pl.BlockSpec(memory_space=pltpu.MemorySpace.VMEM),
        compiler_params=pltpu.CompilerParams(vmem_limit_bytes=vmem_limit),
    )(x, batch_1hot, w1, b1, w2, b2)


# ----------------------------------------------------------------------------- #
# Full GATNet forward
# ----------------------------------------------------------------------------- #
def gatnet_forward(x, adj, batch_1hot, params, *, force_tiled=False):
    n = x.shape[0]
    num_graphs = batch_1hot.shape[1]
    out_dim = params["fc2_w"].shape[1]
    vmem_limit = _vmem_limit()

    # Scatter raw input features into the lane-dense layer-0 layout, bf16.
    in_w = layout_width(params["in_layout"])
    x_pad = jnp.zeros((n, in_w), jnp.bfloat16)
    x_pad = x_pad.at[:, :x.shape[1]].set(x.astype(jnp.bfloat16))

    layers = params["layers"]
    use_fused = (not force_tiled) and n <= 512

    if use_fused:
        adj_bias = jnp.where(adj > 0, 0.0, NEG_INF).astype(jnp.bfloat16)
        args = [x_pad, adj_bias, batch_1hot]
        for lyr in layers:
            args += [lyr["p"]["w"], lyr["p"]["a_dst"], lyr["p"]["a_src_t"],
                     lyr["p"]["bias"]]
        args += [params["fc1_w"], params["fc1_b"], params["fc2_w"],
                 params["fc2_b"]]
        return pl.pallas_call(
            functools.partial(
                fused_gatnet_kernel,
                head_counts=tuple(l["heads"] for l in layers),
                fout_pads=tuple(l["fout_pad"] for l in layers),
                num_graphs=num_graphs),
            out_shape=jax.ShapeDtypeStruct((num_graphs, out_dim), jnp.float32),
            in_specs=[pl.BlockSpec(memory_space=pltpu.MemorySpace.VMEM)] * len(args),
            out_specs=pl.BlockSpec(memory_space=pltpu.MemorySpace.VMEM),
            compiler_params=pltpu.CompilerParams(vmem_limit_bytes=vmem_limit),
        )(*args)

    # -------- tiled large-graph path: pad N to a multiple of 128 ---------------
    n_pad = _round_up(n, LANE)
    if n_pad != n:
        pad = n_pad - n
        x_pad = jnp.pad(x_pad, ((0, pad), (0, 0)))
        adj_p = jnp.pad(adj, ((0, pad), (0, pad)))
        # padded rows get a self-loop so every row has >= 1 neighbour (finite
        # softmax); they never feed real rows and are excluded from pooling.
        diag = jnp.concatenate([jnp.zeros((n,), adj.dtype),
                                jnp.ones((pad,), adj.dtype)])
        adj_p = adj_p + jnp.diag(diag)
        batch_p = jnp.pad(batch_1hot, ((0, pad), (0, 0)))
    else:
        adj_p, batch_p = adj, batch_1hot
    adj_bias = jnp.where(adj_p > 0, 0.0, NEG_INF).astype(jnp.bfloat16)

    h = x_pad
    for lyr in layers:
        h = gat_layer_tiled(h, adj_bias, lyr["p"], heads=lyr["heads"],
                            fout_pad=lyr["fout_pad"], vmem_limit=vmem_limit)
    return pool_mlp(h, batch_p, params["fc1_w"], params["fc1_b"],
                    params["fc2_w"], params["fc2_b"], vmem_limit=vmem_limit)


# ----------------------------------------------------------------------------- #
# Parameter construction (GATConv weights packed into the padded layout).
# ----------------------------------------------------------------------------- #
def _bf16_round(a):
    return a.astype(jnp.bfloat16).astype(jnp.float32)


def make_gat_params(key, in_layout, fout, heads, scale=0.25):
    fin = in_layout.heads * in_layout.fout
    k1, k2, k3, k4 = jax.random.split(key, 4)
    # Raw (unpadded) weights are bf16-rounded so the f32 reference uses exactly
    # the values the kernels see.
    w = _bf16_round(scale * jax.random.normal(k1, (fin, heads * fout), jnp.float32))
    a_src = _bf16_round(scale * jax.random.normal(k2, (heads, fout), jnp.float32))
    a_dst = _bf16_round(scale * jax.random.normal(k3, (heads, fout), jnp.float32))
    bias = scale * jax.random.normal(k4, (heads * fout,), jnp.float32)

    out_layout = Layout(heads, fout, _round_up(fout, LANE))
    in_pos = layout_positions(in_layout)
    out_pos = layout_positions(out_layout)
    in_w, out_w = layout_width(in_layout), layout_width(out_layout)

    w_pad = np.zeros((in_w, out_w), np.float32)
    w_pad[np.ix_(in_pos, out_pos)] = np.asarray(w)

    asp = np.zeros((heads, out_w), np.float32)      # packed a_src (row layout)
    adp = np.zeros((out_w, heads), np.float32)      # packed a_dst
    for hd in range(heads):
        cols = hd * out_layout.fout_pad + np.arange(fout)
        asp[hd, cols] = np.asarray(a_src)[hd]
        adp[cols, hd] = np.asarray(a_dst)[hd]

    b_pad = np.zeros((1, out_w), np.float32)
    b_pad[0, out_pos] = np.asarray(bias)

    padded = {
        "w": jnp.asarray(w_pad, jnp.bfloat16),
        "a_src_t": jnp.asarray(asp, jnp.bfloat16),
        "a_dst": jnp.asarray(adp, jnp.bfloat16),
        "bias": jnp.asarray(b_pad, jnp.float32),
    }
    raw = {"w": w, "a_src": a_src, "a_dst": a_dst, "bias": bias}
    return padded, raw, out_layout


# ----------------------------------------------------------------------------- #
# Pure-JAX f32 reference (dense GATConv semantics) for validation.
# ----------------------------------------------------------------------------- #
def gatnet_reference(x, adj, batch_1hot, raw_layers, fc1_w, fc1_b, fc2_w, fc2_b):
    n = x.shape[0]

    def gat(xv, r, heads, fout):
        h = xv @ r["w"]
        hh = h.reshape(n, heads, fout)
        a_d = jnp.einsum("nhf,hf->nh", hh, r["a_dst"])
        a_s = jnp.einsum("nhf,hf->nh", hh, r["a_src"])
        outs = []
        for hd in range(heads):
            logits = a_d[:, hd][:, None] + a_s[:, hd][None, :]
            logits = jnp.where(logits > 0, logits, 0.2 * logits)
            masked = jnp.where(adj > 0, logits, NEG_INF)
            attn = jax.nn.softmax(masked, axis=-1)
            outs.append(attn @ hh[:, hd, :])
        out = jnp.concatenate(outs, axis=-1)
        return jax.nn.relu(out + r["bias"][None, :])

    h = x
    for (r, heads, fout) in raw_layers:
        h = gat(h, r, heads, fout)

    pooled = []
    for g in range(batch_1hot.shape[1]):
        vals = jnp.where(batch_1hot[:, g:g + 1] > 0, h, NEG_INF)
        pooled.append(jnp.max(vals, axis=0))
    pooled = jnp.stack(pooled, axis=0)
    y = jax.nn.relu(pooled @ fc1_w + fc1_b[None, :])
    y = jax.nn.relu(y @ fc2_w + fc2_b[None, :])
    return y


def build_ring_graph(n, num_graphs):
    """Ring graph per subgraph + self-loops; dense adj[dst, src] + one-hot batch."""
    adj = np.zeros((n, n), np.float32)
    batch = np.zeros((n, num_graphs), np.float32)
    per = n // num_graphs
    for g in range(num_graphs):
        base = g * per
        for i in range(per):
            j = (i + 1) % per
            adj[base + i, base + j] = 1.0
            adj[base + j, base + i] = 1.0
            batch[base + i, g] = 1.0
    for i in range(n):
        adj[i, i] = 1.0
    return jnp.asarray(adj), jnp.asarray(batch)


def _rel_err(a, b):
    return float(jnp.max(jnp.abs(a - b)) / jnp.maximum(jnp.max(jnp.abs(b)), 1e-3))


if __name__ == "__main__":
    # GATNet(input_dim=8, n_heads=2, hid_dim=32, out_dim=8, dropout) in eval mode.
    input_dim, n_heads, hid_dim, out_dim = 8, 2, 32, 8
    N, G = 16, 2                                  # 2 ring graphs x 8 nodes

    key = jax.random.PRNGKey(0)
    keys = jax.random.split(key, 10)

    # Node features (bf16-rounded so the kernel's cast is exact vs. reference).
    x = _bf16_round(jax.random.normal(keys[0], (N, input_dim), jnp.float32))
    adj, batch_1hot = build_ring_graph(N, G)

    # Parameters, mirroring GATNet.__init__ (deterministic synthetic init).
    in_layout0 = Layout(1, input_dim, _round_up(input_dim, LANE))
    p1, r1, lay1 = make_gat_params(keys[1], in_layout0, input_dim, n_heads)
    p2, r2, lay2 = make_gat_params(keys[2], lay1, input_dim * n_heads, n_heads)
    p3, r3, lay3 = make_gat_params(keys[3], lay2, input_dim * n_heads * n_heads, 1)
    d3 = input_dim * n_heads * n_heads            # conv3 output width (32)

    fc1_w = _bf16_round(0.25 * jax.random.normal(keys[4], (d3, hid_dim), jnp.float32))
    fc1_b = 0.25 * jax.random.normal(keys[5], (hid_dim,), jnp.float32)
    fc2_w = _bf16_round(0.25 * jax.random.normal(keys[6], (hid_dim, out_dim), jnp.float32))
    fc2_b = 0.25 * jax.random.normal(keys[7], (out_dim,), jnp.float32)
    fc1_w_pad = np.zeros((layout_width(lay3), hid_dim), np.float32)
    fc1_w_pad[layout_positions(lay3), :] = np.asarray(fc1_w)

    params = {
        "in_layout": in_layout0,
        "layers": [
            {"p": p1, "heads": n_heads, "fout_pad": lay1.fout_pad},
            {"p": p2, "heads": n_heads, "fout_pad": lay2.fout_pad},
            {"p": p3, "heads": 1, "fout_pad": lay3.fout_pad},
        ],
        "fc1_w": jnp.asarray(fc1_w_pad, jnp.bfloat16),
        "fc1_b": jnp.asarray(fc1_b).reshape(1, -1),
        "fc2_w": jnp.asarray(fc2_w, jnp.bfloat16),
        "fc2_b": jnp.asarray(fc2_b).reshape(1, -1),
    }
    raw_layers = [(r1, n_heads, input_dim),
                  (r2, n_heads, input_dim * n_heads),
                  (r3, 1, d3)]

    # 1) Toy shape -> fully-fused single-kernel path.
    out = gatnet_forward(x, adj, batch_1hot, params)
    out = jax.block_until_ready(out)
    assert out.shape == (G, out_dim) and out.dtype == jnp.float32
    ref = gatnet_reference(x, adj, batch_1hot, raw_layers, fc1_w, fc1_b, fc2_w, fc2_b)
    err = _rel_err(out, ref)
    assert err < 5e-2, f"fused path mismatch: rel err {err}"

    # 2) Larger graph (N=200 -> padded to 256) -> tiled gridded path.
    N2 = 200
    x2 = _bf16_round(jax.random.normal(keys[8], (N2, input_dim), jnp.float32))
    adj2, batch2 = build_ring_graph(N2, G)
    out2 = gatnet_forward(x2, adj2, batch2, params, force_tiled=True)
    out2 = jax.block_until_ready(out2)
    ref2 = gatnet_reference(x2, adj2, batch2, raw_layers, fc1_w, fc1_b, fc2_w, fc2_b)
    err2 = _rel_err(out2, ref2)
    assert err2 < 5e-2, f"tiled path mismatch: rel err {err2}"

    print("KERNEL_OK")
</pallas_src>

<mosaic_0001>
module attributes {stable_mosaic.version = 11 : i64} {
  func.func @fused_gatnet_kernel(%arg0: memref<16x128xbf16, #tpu.memory_space<vmem>>, %arg1: memref<16x16xbf16, #tpu.memory_space<vmem>>, %arg2: memref<16x2xf32, #tpu.memory_space<vmem>>, %arg3: memref<128x256xbf16, #tpu.memory_space<vmem>>, %arg4: memref<256x2xbf16, #tpu.memory_space<vmem>>, %arg5: memref<2x256xbf16, #tpu.memory_space<vmem>>, %arg6: memref<1x256xf32, #tpu.memory_space<vmem>>, %arg7: memref<256x256xbf16, #tpu.memory_space<vmem>>, %arg8: memref<256x2xbf16, #tpu.memory_space<vmem>>, %arg9: memref<2x256xbf16, #tpu.memory_space<vmem>>, %arg10: memref<1x256xf32, #tpu.memory_space<vmem>>, %arg11: memref<256x128xbf16, #tpu.memory_space<vmem>>, %arg12: memref<128x1xbf16, #tpu.memory_space<vmem>>, %arg13: memref<1x128xbf16, #tpu.memory_space<vmem>>, %arg14: memref<1x128xf32, #tpu.memory_space<vmem>>, %arg15: memref<128x32xbf16, #tpu.memory_space<vmem>>, %arg16: memref<1x32xf32, #tpu.memory_space<vmem>>, %arg17: memref<32x8xbf16, #tpu.memory_space<vmem>>, %arg18: memref<1x8xf32, #tpu.memory_space<vmem>>, %arg19: memref<2x8xf32, #tpu.memory_space<vmem>>) attributes {dimension_semantics = [], scalar_prefetch = 0 : i64, scratch_operands = 0 : i64, tpu.core_type = #tpu.core_type<tc>} {
    %c0 = arith.constant 0 : index
    %c0_0 = arith.constant 0 : index
    %0 = vector.load %arg1[%c0, %c0_0] : memref<16x16xbf16, #tpu.memory_space<vmem>>, vector<16x16xbf16>
    %1 = arith.extf %0 : vector<16x16xbf16> to vector<16x16xf32>
    %c0_1 = arith.constant 0 : index
    %c0_2 = arith.constant 0 : index
    %2 = vector.load %arg0[%c0_1, %c0_2] : memref<16x128xbf16, #tpu.memory_space<vmem>>, vector<16x128xbf16>
    %c0_3 = arith.constant 0 : index
    %c0_4 = arith.constant 0 : index
    %3 = vector.load %arg3[%c0_3, %c0_4] : memref<128x256xbf16, #tpu.memory_space<vmem>>, vector<128x256xbf16>
    %cst = arith.constant dense<0.000000e+00> : vector<16x256xf32>
    %4 = tpu.matmul %2, %3, %cst {dimension_numbers = #tpu.dot_dimension_numbers<[1], [0], [0], [1], [0, 0, 1, 1], [], []>} : vector<16x128xbf16>, vector<128x256xbf16>, vector<16x256xf32> -> vector<16x256xf32>
    %5 = arith.truncf %4 : vector<16x256xf32> to vector<16x256xbf16>
    %c0_5 = arith.constant 0 : index
    %c0_6 = arith.constant 0 : index
    %6 = vector.load %arg4[%c0_5, %c0_6] : memref<256x2xbf16, #tpu.memory_space<vmem>>, vector<256x2xbf16>
    %cst_7 = arith.constant dense<0.000000e+00> : vector<16x2xf32>
    %7 = tpu.matmul %5, %6, %cst_7 {dimension_numbers = #tpu.dot_dimension_numbers<[1], [0], [0], [1], [0, 0, 1, 1], [], []>} : vector<16x256xbf16>, vector<256x2xbf16>, vector<16x2xf32> -> vector<16x2xf32>
    %c0_8 = arith.constant 0 : index
    %c0_9 = arith.constant 0 : index
    %8 = vector.load %arg5[%c0_8, %c0_9] : memref<2x256xbf16, #tpu.memory_space<vmem>>, vector<2x256xbf16>
    %cst_10 = arith.constant dense<0.000000e+00> : vector<2x16xf32>
    %9 = tpu.matmul %8, %5, %cst_10 {dimension_numbers = #tpu.dot_dimension_numbers<[1], [1], [0], [0], [0, 0, 1, 0], [], []>} : vector<2x256xbf16>, vector<16x256xbf16>, vector<2x16xf32> -> vector<2x16xf32>
    %10 = vector.extract_strided_slice %7 {offsets = [0, 0], sizes = [16, 1], strides = [1, 1]} : vector<16x2xf32> to vector<16x1xf32>
    %11 = vector.extract_strided_slice %9 {offsets = [0, 0], sizes = [1, 16], strides = [1, 1]} : vector<2x16xf32> to vector<1x16xf32>
    %12 = vector.broadcast %10 : vector<16x1xf32> to vector<16x16xf32>
    %13 = vector.broadcast %11 : vector<1x16xf32> to vector<16x16xf32>
    %14 = arith.addf %12, %13 : vector<16x16xf32>
    %cst_11 = arith.constant 2.000000e-01 : f32
    %15 = vector.broadcast %cst_11 : f32 to vector<16x16xf32>
    %16 = arith.mulf %15, %14 : vector<16x16xf32>
    %17 = arith.maximumf %14, %16 : vector<16x16xf32>
    %18 = arith.addf %17, %1 : vector<16x16xf32>
    %cst_12 = arith.constant dense<0xFF800000> : vector<16xf32>
    %19 = vector.multi_reduction <maximumf>, %18, %cst_12 [1] : vector<16x16xf32> to vector<16xf32>
    %20 = vector.shape_cast %19 : vector<16xf32> to vector<16x1xf32>
    %21 = vector.broadcast %20 : vector<16x1xf32> to vector<16x16xf32>
    %22 = arith.subf %18, %21 : vector<16x16xf32>
    %23 = math.exp %22 : vector<16x16xf32>
    %cst_13 = arith.constant dense<0.000000e+00> : vector<16xf32>
    %24 = vector.multi_reduction <add>, %23, %cst_13 [1] : vector<16x16xf32> to vector<16xf32>
    %25 = vector.shape_cast %24 : vector<16xf32> to vector<16x1xf32>
    %26 = tpu.reciprocal %25 {approx = true} : vector<16x1xf32> -> vector<16x1xf32>
    %27 = vector.broadcast %26 : vector<16x1xf32> to vector<16x16xf32>
    %28 = arith.mulf %23, %27 : vector<16x16xf32>
    %29 = arith.truncf %28 : vector<16x16xf32> to vector<16x16xbf16>
    %30 = vector.extract_strided_slice %5 {offsets = [0, 0], sizes = [16, 128], strides = [1, 1]} : vector<16x256xbf16> to vector<16x128xbf16>
    %cst_14 = arith.constant dense<0.000000e+00> : vector<16x128xf32>
    %31 = tpu.matmul %29, %30, %cst_14 {dimension_numbers = #tpu.dot_dimension_numbers<[1], [0], [0], [1], [0, 0, 1, 1], [], []>} : vector<16x16xbf16>, vector<16x128xbf16>, vector<16x128xf32> -> vector<16x128xf32>
    %32 = vector.extract_strided_slice %7 {offsets = [0, 1], sizes = [16, 1], strides = [1, 1]} : vector<16x2xf32> to vector<16x1xf32>
    %33 = vector.extract_strided_slice %9 {offsets = [1, 0], sizes = [1, 16], strides = [1, 1]} : vector<2x16xf32> to vector<1x16xf32>
    %34 = vector.broadcast %32 : vector<16x1xf32> to vector<16x16xf32>
    %35 = vector.broadcast %33 : vector<1x16xf32> to vector<16x16xf32>
    %36 = arith.addf %34, %35 : vector<16x16xf32>
    %cst_15 = arith.constant 2.000000e-01 : f32
    %37 = vector.broadcast %cst_15 : f32 to vector<16x16xf32>
    %38 = arith.mulf %37, %36 : vector<16x16xf32>
    %39 = arith.maximumf %36, %38 : vector<16x16xf32>
    %40 = arith.addf %39, %1 : vector<16x16xf32>
    %cst_16 = arith.constant dense<0xFF800000> : vector<16xf32>
    %41 = vector.multi_reduction <maximumf>, %40, %cst_16 [1] : vector<16x16xf32> to vector<16xf32>
    %42 = vector.shape_cast %41 : vector<16xf32> to vector<16x1xf32>
    %43 = vector.broadcast %42 : vector<16x1xf32> to vector<16x16xf32>
    %44 = arith.subf %40, %43 : vector<16x16xf32>
    %45 = math.exp %44 : vector<16x16xf32>
    %cst_17 = arith.constant dense<0.000000e+00> : vector<16xf32>
    %46 = vector.multi_reduction <add>, %45, %cst_17 [1] : vector<16x16xf32> to vector<16xf32>
    %47 = vector.shape_cast %46 : vector<16xf32> to vector<16x1xf32>
    %48 = tpu.reciprocal %47 {approx = true} : vector<16x1xf32> -> vector<16x1xf32>
    %49 = vector.broadcast %48 : vector<16x1xf32> to vector<16x16xf32>
    %50 = arith.mulf %45, %49 : vector<16x16xf32>
    %51 = arith.truncf %50 : vector<16x16xf32> to vector<16x16xbf16>
    %52 = vector.extract_strided_slice %5 {offsets = [0, 128], sizes = [16, 128], strides = [1, 1]} : vector<16x256xbf16> to vector<16x128xbf16>
    %cst_18 = arith.constant dense<0.000000e+00> : vector<16x128xf32>
    %53 = tpu.matmul %51, %52, %cst_18 {dimension_numbers = #tpu.dot_dimension_numbers<[1], [0], [0], [1], [0, 0, 1, 1], [], []>} : vector<16x16xbf16>, vector<16x128xbf16>, vector<16x128xf32> -> vector<16x128xf32>
    %54 = tpu.concatenate %31, %53 in 1 : vector<16x128xf32>, vector<16x128xf32> -> vector<16x256xf32>
    %c0_19 = arith.constant 0 : index
    %c0_20 = arith.constant 0 : index
    %55 = vector.load %arg6[%c0_19, %c0_20] : memref<1x256xf32, #tpu.memory_space<vmem>>, vector<1x256xf32>
    %56 = vector.broadcast %55 : vector<1x256xf32> to vector<16x256xf32>
    %57 = arith.addf %54, %56 : vector<16x256xf32>
    %cst_21 = arith.constant 0.000000e+00 : f32
    %58 = vector.broadcast %cst_21 : f32 to vector<16x256xf32>
    %59 = arith.maximumf %57, %58 : vector<16x256xf32>
    %60 = arith.truncf %59 : vector<16x256xf32> to vector<16x256xbf16>
    %c0_22 = arith.constant 0 : index
    %c0_23 = arith.constant 0 : index
    %61 = vector.load %arg7[%c0_22, %c0_23] : memref<256x256xbf16, #tpu.memory_space<vmem>>, vector<256x256xbf16>
    %cst_24 = arith.constant dense<0.000000e+00> : vector<16x256xf32>
    %62 = tpu.matmul %60, %61, %cst_24 {dimension_numbers = #tpu.dot_dimension_numbers<[1], [0], [0], [1], [0, 0, 1, 1], [], []>} : vector<16x256xbf16>, vector<256x256xbf16>, vector<16x256xf32> -> vector<16x256xf32>
    %63 = arith.truncf %62 : vector<16x256xf32> to vector<16x256xbf16>
    %c0_25 = arith.constant 0 : index
    %c0_26 = arith.constant 0 : index
    %64 = vector.load %arg8[%c0_25, %c0_26] : memref<256x2xbf16, #tpu.memory_space<vmem>>, vector<256x2xbf16>
    %cst_27 = arith.constant dense<0.000000e+00> : vector<16x2xf32>
    %65 = tpu.matmul %63, %64, %cst_27 {dimension_numbers = #tpu.dot_dimension_numbers<[1], [0], [0], [1], [0, 0, 1, 1], [], []>} : vector<16x256xbf16>, vector<256x2xbf16>, vector<16x2xf32> -> vector<16x2xf32>
    %c0_28 = arith.constant 0 : index
    %c0_29 = arith.constant 0 : index
    %66 = vector.load %arg9[%c0_28, %c0_29] : memref<2x256xbf16, #tpu.memory_space<vmem>>, vector<2x256xbf16>
    %cst_30 = arith.constant dense<0.000000e+00> : vector<2x16xf32>
    %67 = tpu.matmul %66, %63, %cst_30 {dimension_numbers = #tpu.dot_dimension_numbers<[1], [1], [0], [0], [0, 0, 1, 0], [], []>} : vector<2x256xbf16>, vector<16x256xbf16>, vector<2x16xf32> -> vector<2x16xf32>
    %68 = vector.extract_strided_slice %65 {offsets = [0, 0], sizes = [16, 1], strides = [1, 1]} : vector<16x2xf32> to vector<16x1xf32>
    %69 = vector.extract_strided_slice %67 {offsets = [0, 0], sizes = [1, 16], strides = [1, 1]} : vector<2x16xf32> to vector<1x16xf32>
    %70 = vector.broadcast %68 : vector<16x1xf32> to vector<16x16xf32>
    %71 = vector.broadcast %69 : vector<1x16xf32> to vector<16x16xf32>
    %72 = arith.addf %70, %71 : vector<16x16xf32>
    %cst_31 = arith.constant 2.000000e-01 : f32
    %73 = vector.broadcast %cst_31 : f32 to vector<16x16xf32>
    %74 = arith.mulf %73, %72 : vector<16x16xf32>
    %75 = arith.maximumf %72, %74 : vector<16x16xf32>
    %76 = arith.addf %75, %1 : vector<16x16xf32>
    %cst_32 = arith.constant dense<0xFF800000> : vector<16xf32>
    %77 = vector.multi_reduction <maximumf>, %76, %cst_32 [1] : vector<16x16xf32> to vector<16xf32>
    %78 = vector.shape_cast %77 : vector<16xf32> to vector<16x1xf32>
    %79 = vector.broadcast %78 : vector<16x1xf32> to vector<16x16xf32>
    %80 = arith.subf %76, %79 : vector<16x16xf32>
    %81 = math.exp %80 : vector<16x16xf32>
    %cst_33 = arith.constant dense<0.000000e+00> : vector<16xf32>
    %82 = vector.multi_reduction <add>, %81, %cst_33 [1] : vector<16x16xf32> to vector<16xf32>
    %83 = vector.shape_cast %82 : vector<16xf32> to vector<16x1xf32>
    %84 = tpu.reciprocal %83 {approx = true} : vector<16x1xf32> -> vector<16x1xf32>
    %85 = vector.broadcast %84 : vector<16x1xf32> to vector<16x16xf32>
    %86 = arith.mulf %81, %85 : vector<16x16xf32>
    %87 = arith.truncf %86 : vector<16x16xf32> to vector<16x16xbf16>
    %88 = vector.extract_strided_slice %63 {offsets = [0, 0], sizes = [16, 128], strides = [1, 1]} : vector<16x256xbf16> to vector<16x128xbf16>
    %cst_34 = arith.constant dense<0.000000e+00> : vector<16x128xf32>
    %89 = tpu.matmul %87, %88, %cst_34 {dimension_numbers = #tpu.dot_dimension_numbers<[1], [0], [0], [1], [0, 0, 1, 1], [], []>} : vector<16x16xbf16>, vector<16x128xbf16>, vector<16x128xf32> -> vector<16x128xf32>
    %90 = vector.extract_strided_slice %65 {offsets = [0, 1], sizes = [16, 1], strides = [1, 1]} : vector<16x2xf32> to vector<16x1xf32>
    %91 = vector.extract_strided_slice %67 {offsets = [1, 0], sizes = [1, 16], strides = [1, 1]} : vector<2x16xf32> to vector<1x16xf32>
    %92 = vector.broadcast %90 : vector<16x1xf32> to vector<16x16xf32>
    %93 = vector.broadcast %91 : vector<1x16xf32> to vector<16x16xf32>
    %94 = arith.addf %92, %93 : vector<16x16xf32>
    %cst_35 = arith.constant 2.000000e-01 : f32
    %95 = vector.broadcast %cst_35 : f32 to vector<16x16xf32>
    %96 = arith.mulf %95, %94 : vector<16x16xf32>
    %97 = arith.maximumf %94, %96 : vector<16x16xf32>
    %98 = arith.addf %97, %1 : vector<16x16xf32>
    %cst_36 = arith.constant dense<0xFF800000> : vector<16xf32>
    %99 = vector.multi_reduction <maximumf>, %98, %cst_36 [1] : vector<16x16xf32> to vector<16xf32>
    %100 = vector.shape_cast %99 : vector<16xf32> to vector<16x1xf32>
    %101 = vector.broadcast %100 : vector<16x1xf32> to vector<16x16xf32>
    %102 = arith.subf %98, %101 : vector<16x16xf32>
    %103 = math.exp %102 : vector<16x16xf32>
    %cst_37 = arith.constant dense<0.000000e+00> : vector<16xf32>
    %104 = vector.multi_reduction <add>, %103, %cst_37 [1] : vector<16x16xf32> to vector<16xf32>
    %105 = vector.shape_cast %104 : vector<16xf32> to vector<16x1xf32>
    %106 = tpu.reciprocal %105 {approx = true} : vector<16x1xf32> -> vector<16x1xf32>
    %107 = vector.broadcast %106 : vector<16x1xf32> to vector<16x16xf32>
    %108 = arith.mulf %103, %107 : vector<16x16xf32>
    %109 = arith.truncf %108 : vector<16x16xf32> to vector<16x16xbf16>
    %110 = vector.extract_strided_slice %63 {offsets = [0, 128], sizes = [16, 128], strides = [1, 1]} : vector<16x256xbf16> to vector<16x128xbf16>
    %cst_38 = arith.constant dense<0.000000e+00> : vector<16x128xf32>
    %111 = tpu.matmul %109, %110, %cst_38 {dimension_numbers = #tpu.dot_dimension_numbers<[1], [0], [0], [1], [0, 0, 1, 1], [], []>} : vector<16x16xbf16>, vector<16x128xbf16>, vector<16x128xf32> -> vector<16x128xf32>
    %112 = tpu.concatenate %89, %111 in 1 : vector<16x128xf32>, vector<16x128xf32> -> vector<16x256xf32>
    %c0_39 = arith.constant 0 : index
    %c0_40 = arith.constant 0 : index
    %113 = vector.load %arg10[%c0_39, %c0_40] : memref<1x256xf32, #tpu.memory_space<vmem>>, vector<1x256xf32>
    %114 = vector.broadcast %113 : vector<1x256xf32> to vector<16x256xf32>
    %115 = arith.addf %112, %114 : vector<16x256xf32>
    %cst_41 = arith.constant 0.000000e+00 : f32
    %116 = vector.broadcast %cst_41 : f32 to vector<16x256xf32>
    %117 = arith.maximumf %115, %116 : vector<16x256xf32>
    %118 = arith.truncf %117 : vector<16x256xf32> to vector<16x256xbf16>
    %c0_42 = arith.constant 0 : index
    %c0_43 = arith.constant 0 : index
    %119 = vector.load %arg11[%c0_42, %c0_43] : memref<256x128xbf16, #tpu.memory_space<vmem>>, vector<256x128xbf16>
    %cst_44 = arith.constant dense<0.000000e+00> : vector<16x128xf32>
    %120 = tpu.matmul %118, %119, %cst_44 {dimension_numbers = #tpu.dot_dimension_numbers<[1], [0], [0], [1], [0, 0, 1, 1], [], []>} : vector<16x256xbf16>, vector<256x128xbf16>, vector<16x128xf32> -> vector<16x128xf32>
    %121 = arith.truncf %120 : vector<16x128xf32> to vector<16x128xbf16>
    %c0_45 = arith.constant 0 : index
    %c0_46 = arith.constant 0 : index
    %122 = vector.load %arg12[%c0_45, %c0_46] : memref<128x1xbf16, #tpu.memory_space<vmem>>, vector<128x1xbf16>
    %cst_47 = arith.constant dense<0.000000e+00> : vector<16x1xf32>
    %123 = tpu.matmul %121, %122, %cst_47 {dimension_numbers = #tpu.dot_dimension_numbers<[1], [0], [0], [1], [0, 0, 1, 1], [], []>} : vector<16x128xbf16>, vector<128x1xbf16>, vector<16x1xf32> -> vector<16x1xf32>
    %c0_48 = arith.constant 0 : index
    %c0_49 = arith.constant 0 : index
    %124 = vector.load %arg13[%c0_48, %c0_49] : memref<1x128xbf16, #tpu.memory_space<vmem>>, vector<1x128xbf16>
    %cst_50 = arith.constant dense<0.000000e+00> : vector<1x16xf32>
    %125 = tpu.matmul %124, %121, %cst_50 {dimension_numbers = #tpu.dot_dimension_numbers<[1], [1], [0], [0], [0, 0, 1, 0], [], []>} : vector<1x128xbf16>, vector<16x128xbf16>, vector<1x16xf32> -> vector<1x16xf32>
    %126 = vector.broadcast %123 : vector<16x1xf32> to vector<16x16xf32>
    %127 = vector.broadcast %125 : vector<1x16xf32> to vector<16x16xf32>
    %128 = arith.addf %126, %127 : vector<16x16xf32>
    %cst_51 = arith.constant 2.000000e-01 : f32
    %129 = vector.broadcast %cst_51 : f32 to vector<16x16xf32>
    %130 = arith.mulf %129, %128 : vector<16x16xf32>
    %131 = arith.maximumf %128, %130 : vector<16x16xf32>
    %132 = arith.addf %131, %1 : vector<16x16xf32>
    %cst_52 = arith.constant dense<0xFF800000> : vector<16xf32>
    %133 = vector.multi_reduction <maximumf>, %132, %cst_52 [1] : vector<16x16xf32> to vector<16xf32>
    %134 = vector.shape_cast %133 : vector<16xf32> to vector<16x1xf32>
    %135 = vector.broadcast %134 : vector<16x1xf32> to vector<16x16xf32>
    %136 = arith.subf %132, %135 : vector<16x16xf32>
    %137 = math.exp %136 : vector<16x16xf32>
    %cst_53 = arith.constant dense<0.000000e+00> : vector<16xf32>
    %138 = vector.multi_reduction <add>, %137, %cst_53 [1] : vector<16x16xf32> to vector<16xf32>
    %139 = vector.shape_cast %138 : vector<16xf32> to vector<16x1xf32>
    %140 = tpu.reciprocal %139 {approx = true} : vector<16x1xf32> -> vector<16x1xf32>
    %141 = vector.broadcast %140 : vector<16x1xf32> to vector<16x16xf32>
    %142 = arith.mulf %137, %141 : vector<16x16xf32>
    %143 = arith.truncf %142 : vector<16x16xf32> to vector<16x16xbf16>
    %cst_54 = arith.constant dense<0.000000e+00> : vector<16x128xf32>
    %144 = tpu.matmul %143, %121, %cst_54 {dimension_numbers = #tpu.dot_dimension_numbers<[1], [0], [0], [1], [0, 0, 1, 1], [], []>} : vector<16x16xbf16>, vector<16x128xbf16>, vector<16x128xf32> -> vector<16x128xf32>
    %c0_55 = arith.constant 0 : index
    %c0_56 = arith.constant 0 : index
    %145 = vector.load %arg14[%c0_55, %c0_56] : memref<1x128xf32, #tpu.memory_space<vmem>>, vector<1x128xf32>
    %146 = vector.broadcast %145 : vector<1x128xf32> to vector<16x128xf32>
    %147 = arith.addf %144, %146 : vector<16x128xf32>
    %cst_57 = arith.constant 0.000000e+00 : f32
    %148 = vector.broadcast %cst_57 : f32 to vector<16x128xf32>
    %149 = arith.maximumf %147, %148 : vector<16x128xf32>
    %150 = arith.truncf %149 : vector<16x128xf32> to vector<16x128xbf16>
    %151 = arith.extf %150 : vector<16x128xbf16> to vector<16x128xf32>
    %c0_58 = arith.constant 0 : index
    %c0_59 = arith.constant 0 : index
    %152 = vector.load %arg2[%c0_58, %c0_59] : memref<16x2xf32, #tpu.memory_space<vmem>>, vector<16x2xf32>
    %153 = vector.extract_strided_slice %152 {offsets = [0, 0], sizes = [16, 1], strides = [1, 1]} : vector<16x2xf32> to vector<16x1xf32>
    %cst_60 = arith.constant 0.000000e+00 : f32
    %154 = vector.broadcast %cst_60 : f32 to vector<16x1xf32>
    %155 = arith.cmpf ogt, %153, %154 : vector<16x1xf32>
    %cst_61 = arith.constant -1.000000e+30 : f32
    %156 = vector.shape_cast %155 : vector<16x1xi1> to vector<16x1xi1>
    %157 = vector.broadcast %156 : vector<16x1xi1> to vector<16x128xi1>
    %158 = vector.broadcast %cst_61 : f32 to vector<16x128xf32>
    %159 = arith.select %157, %151, %158 : vector<16x128xi1>, vector<16x128xf32>
    %cst_62 = arith.constant dense<0xFF800000> : vector<128xf32>
    %160 = vector.multi_reduction <maximumf>, %159, %cst_62 [0] : vector<16x128xf32> to vector<128xf32>
    %161 = vector.shape_cast %160 : vector<128xf32> to vector<1x128xf32>
    %162 = vector.extract_strided_slice %152 {offsets = [0, 1], sizes = [16, 1], strides = [1, 1]} : vector<16x2xf32> to vector<16x1xf32>
    %cst_63 = arith.constant 0.000000e+00 : f32
    %163 = vector.broadcast %cst_63 : f32 to vector<16x1xf32>
    %164 = arith.cmpf ogt, %162, %163 : vector<16x1xf32>
    %cst_64 = arith.constant -1.000000e+30 : f32
    %165 = vector.shape_cast %164 : vector<16x1xi1> to vector<16x1xi1>
    %166 = vector.broadcast %165 : vector<16x1xi1> to vector<16x128xi1>
    %167 = vector.broadcast %cst_64 : f32 to vector<16x128xf32>
    %168 = arith.select %166, %151, %167 : vector<16x128xi1>, vector<16x128xf32>
    %cst_65 = arith.constant dense<0xFF800000> : vector<128xf32>
    %169 = vector.multi_reduction <maximumf>, %168, %cst_65 [0] : vector<16x128xf32> to vector<128xf32>
    %170 = vector.shape_cast %169 : vector<128xf32> to vector<1x128xf32>
    %171 = tpu.concatenate %161, %170 in 0 : vector<1x128xf32>, vector<1x128xf32> -> vector<2x128xf32>
    %172 = arith.truncf %171 : vector<2x128xf32> to vector<2x128xbf16>
    %c0_66 = arith.constant 0 : index
    %c0_67 = arith.constant 0 : index
    %173 = vector.load %arg15[%c0_66, %c0_67] : memref<128x32xbf16, #tpu.memory_space<vmem>>, vector<128x32xbf16>
    %cst_68 = arith.constant dense<0.000000e+00> : vector<2x32xf32>
    %174 = tpu.matmul %172, %173, %cst_68 {dimension_numbers = #tpu.dot_dimension_numbers<[1], [0], [0], [1], [0, 0, 1, 1], [], []>} : vector<2x128xbf16>, vector<128x32xbf16>, vector<2x32xf32> -> vector<2x32xf32>
    %c0_69 = arith.constant 0 : index
    %c0_70 = arith.constant 0 : index
    %175 = vector.load %arg16[%c0_69, %c0_70] : memref<1x32xf32, #tpu.memory_space<vmem>>, vector<1x32xf32>
    %176 = vector.broadcast %175 : vector<1x32xf32> to vector<2x32xf32>
    %177 = arith.addf %174, %176 : vector<2x32xf32>
    %cst_71 = arith.constant 0.000000e+00 : f32
    %178 = vector.broadcast %cst_71 : f32 to vector<2x32xf32>
    %179 = arith.maximumf %177, %178 : vector<2x32xf32>
    %180 = arith.truncf %179 : vector<2x32xf32> to vector<2x32xbf16>
    %c0_72 = arith.constant 0 : index
    %c0_73 = arith.constant 0 : index
    %181 = vector.load %arg17[%c0_72, %c0_73] : memref<32x8xbf16, #tpu.memory_space<vmem>>, vector<32x8xbf16>
    %cst_74 = arith.constant dense<0.000000e+00> : vector<2x8xf32>
    %182 = tpu.matmul %180, %181, %cst_74 {dimension_numbers = #tpu.dot_dimension_numbers<[1], [0], [0], [1], [0, 0, 1, 1], [], []>} : vector<2x32xbf16>, vector<32x8xbf16>, vector<2x8xf32> -> vector<2x8xf32>
    %c0_75 = arith.constant 0 : index
    %c0_76 = arith.constant 0 : index
    %183 = vector.load %arg18[%c0_75, %c0_76] : memref<1x8xf32, #tpu.memory_space<vmem>>, vector<1x8xf32>
    %184 = vector.broadcast %183 : vector<1x8xf32> to vector<2x8xf32>
    %185 = arith.addf %182, %184 : vector<2x8xf32>
    %cst_77 = arith.constant 0.000000e+00 : f32
    %186 = vector.broadcast %cst_77 : f32 to vector<2x8xf32>
    %187 = arith.maximumf %185, %186 : vector<2x8xf32>
    %c0_78 = arith.constant 0 : index
    %c0_79 = arith.constant 0 : index
    %188 = vector.load %arg19[%c0_78, %c0_79] : memref<2x8xf32, #tpu.memory_space<vmem>>, vector<2x8xf32>
    tpu.vector_store %arg19[%c0_78, %c0_79], %187 {strides = array<i32>} : memref<2x8xf32, #tpu.memory_space<vmem>>, vector<2x8xf32>,
    return
  }
}

</mosaic_0001>

<bundles_post_ra>
// kernel: tpu_custom_call.1
= control target key start
LH: loop header
LB: loop body
LE: loop exit
PB: predicated region body
PF: predicated region fallthrough
CT: control target
= control target key end

     0   :  { %s3127_s0 = inlined_call_operand.vmem [shape: bf16[16,128], index: 0, kind: input, shape index: {}]   ;;  %s3128_s1 = inlined_call_operand.vmem [shape: bf16[16,16], index: 1, kind: input, shape index: {}]   ;;  %s3129_s2 = inlined_call_operand.vmem [shape: f32[16,2], index: 2, kind: input, shape index: {}]   ;;  %s3130_s3 = inlined_call_operand.vmem [shape: bf16[128,256], index: 3, kind: input, shape index: {}]   ;;  %s3131_s4 = inlined_call_operand.vmem [shape: bf16[256,2], index: 4, kind: input, shape index: {}]   ;;  %s3132_s5 = inlined_call_operand.vmem [shape: bf16[2,256], index: 5, kind: input, shape index: {}]   ;;  %s3133_s6 = inlined_call_operand.vmem [shape: f32[1,256], index: 6, kind: input, shape index: {}]   ;;  %s3134_s7 = inlined_call_operand.vmem [shape: bf16[256,256], index: 7, kind: input, shape index: {}]   ;;  %s3135_s8 = inlined_call_operand.vmem [shape: bf16[256,2], index: 8, kind: input, shape index: {}]   ;;  %s3136_s9 = inlined_call_operand.vmem [shape: bf16[2,256], index: 9, kind: input, shape index: {}]   ;;  %s3137_s10 = inlined_call_operand.vmem [shape: f32[1,256], index: 10, kind: input, shape index: {}]   ;;  %s3138_s11 = inlined_call_operand.hbm [shape: bf16[256,128], index: 11, kind: input, shape index: {}]   ;;  %s3139_s12 = inlined_call_operand.vmem [shape: bf16[128,1], index: 12, kind: input, shape index: {}]   ;;  %s3140_s13 = inlined_call_operand.vmem [shape: bf16[1,128], index: 13, kind: input, shape index: {}]   ;;  %s3141_s14 = inlined_call_operand.vmem [shape: f32[1,128], index: 14, kind: input, shape index: {}]   ;;  %s3142_s15 = inlined_call_operand.vmem [shape: bf16[128,32], index: 15, kind: input, shape index: {}]   ;;  %s3143_s16 = inlined_call_operand.vmem [shape: f32[1,32], index: 16, kind: input, shape index: {}]   ;;  %s3144_s17 = inlined_call_operand.vmem [shape: bf16[32,8], index: 17, kind: input, shape index: {}]   ;;  %s3145_s18 = inlined_call_operand.vmem [shape: f32[1,8], index: 18, kind: input, shape index: {}]   ;;  %s3146_s19 = inlined_call_operand.hbm [shape: f32[2,8], index: 19, kind: output, shape index: {}]  }
   0x1   :  { %3149 = sst [smem:[#allocation8_spill]] %s3127_s0 }
   0x2   :  { %3150 = sst [smem:[#allocation9_spill]] %s3128_s1 }
   0x3   :  { %3151 = sst [smem:[#allocation10_spill]] %s3129_s2 }
   0x4   :  { %3152 = sst [smem:[#allocation11_spill]] %s3130_s3 }
   0x5   :  { %24 = vsyncpa [#allocation3], 0 }
   0x6   :  { %25 = vsyncpa [#allocation4], 0  ;;  %s2549_s0 = smov [#allocation2]   ;;  %s2501_s1 = scalar_lea.hbm %s3138_s11, 2048 }
   0x7   :  { %s53_s30 = sshll.u32 %s2549_s0, 4  ;;  %p2502_p0 = scmp.ne.s32.totalorder %s3138_s11, %s2501_s1  ;;  %s54_s30 = int_to_ptr.vmem [resolvable:$true] %s53_s30 }
   0x8   :  { %p2505_p1 = scmp.lt.u32.totalorder %s2501_s1, %s3138_s11 }
   0xa   :  { %p2507_p2 = pnand %p2505_p1, %p2502_p0 }
   0xc   :  { %2510 = shalt.err (!%p2507_p2)
}
   0xd   :  { %s2511_s25 = scalar_lea.vmem %s54_s30, 2048  ;;  %p2516_p4 = scmp.lt.s32.totalorder %s54_s30, %s54_s30 }
   0xe   :  { %p2512_p3 = scmp.ne.s32.totalorder %s54_s30, %s2511_s25  ;;  %p2517_p5 = scmp.lt.s32.totalorder %s2511_s25, %s2511_s25 }
  0x10   :  { %p2518_p6 = por %p2517_p5, %p2516_p4 }
  0x12   :  { %p2519_p7 = pnand %p2518_p6, %p2512_p3 }
  0x14   :  { %2522 = shalt.err (!%p2519_p7)
}
  0x15   :  { %s2550_s3 = smov 64   ;;  %s2551_s26 = smov 4  }
  0x16   :  { %59 = dma.hbm_to_vmem [thread:$0]  %s3138_s11, 2048, %s54_s30, [#allocation3], %s2550_s3, %s2550_s3, %s2551_s26  }
  0x17   :  { %2545 = dma.done.wait [#allocation3], 2048  }
  0x18   :  { %2546 = vsyncadd [#allocation3], 4294965248  ;;  %v2552_v0 = vmov 0   ;;  %s3153_s20 = sld [smem:[#allocation11_spill]]  ;;  %v2347_v10 = vld [vmem:[%s3131_s4 + $0x40] sm:$0xff]   ;;  %v2349_v14 = vld [vmem:[%s3131_s4 + $0x48] sm:$0xff]   ;;  %v413_v37 = vlaneseq }
  0x19   :  { %218 = vmatprep.mubr.bf16.mxu0 %v2552_v0  ;;  %2316 = vset.pattern.permute.xlu1 %v2552_v0  ;;  %v2348_v12 = vld [vmem:[%s3131_s4] sm:$0xff]   ;;  %v2350_v15 = vld [vmem:[%s3131_s4 + $0x8] sm:$0xff]   ;;  %v2351_v16 = vld [vmem:[%s3131_s4 + $0x50] sm:$0xff]   ;;  %s3154_s3 = sld [smem:[#allocation8_spill]]  ;;  %v2553_v34 = vmov 0.0   ;;  %v2555_v51 = vmov 1  }
  0x1a   :  { %2123 = vmatprep.subr.bf16.mxu1 %v2347_v10  ;;  %v2352_v19 = vld [vmem:[%s3131_s4 + $0x10] sm:$0xff]   ;;  %v2353_v20 = vld [vmem:[%s3131_s4 + $0x58] sm:$0xff]   ;;  %v2355_v24 = vld [vmem:[%s3131_s4 + $0x60] sm:$0xff]   ;;  %v2554_v35 = vmov 1966171168   ;;  %v414_v39 = vshrl.u32 %v413_v37, 7  ;;  %2315 = vset.pattern.permute.xlu0 %v2555_v51 }
  0x1b   :  { %2124 = vmatpush3.bf16.msra.mxu1 %v2348_v12  ;;  %v2354_v23 = vld [vmem:[%s3131_s4 + $0x18] sm:$0xff]   ;;  %v2356_v26 = vld [vmem:[%s3131_s4 + $0x20] sm:$0xff]   ;;  %v2357_v27 = vld [vmem:[%s3131_s4 + $0x68] sm:$0xff]   ;;  %v411_v36 = vunpack.c.l.s4 %v2554_v35  ;;  %s3155_s23 = sld [smem:[#allocation9_spill]]  ;;  %vm488_vm0 = vcmask 130048   ;;  %vm2556_vm1 = vmmov 0  }
  0x1c   :  { %2125 = vmatprep.subr.bf16.mxu1 %v2349_v14  ;;  %v2358_v29 = vld [vmem:[%s3131_s4 + $0x28] sm:$0xff]   ;;  %v2359_v30 = vld [vmem:[%s3131_s4 + $0x70] sm:$0xff]   ;;  %v2361_v32 = vld [vmem:[%s3131_s4 + $0x78] sm:$0xff]   ;;  %v2782_v62 = vsub.s32 0, %v414_v39  ;;  %v2784_v63 = vsub.s32 1, %v414_v39  ;;  %vm1792_vm8 = vcmask 1040384  }
  0x1d   :  { %v2360_v31 = vld [vmem:[%s3131_s4 + $0x30] sm:$0xff]   ;;  %v2362_v33 = vld [vmem:[%s3131_s4 + $0x38] sm:$0xff]   ;;  %v412_v38 = vunpack.c.0.s8 %v411_v36  ;;  %v2026_v40 = vld.sshfl [vmem:[%s3132_s5] sm:$0x11 pattern:$0x75316420] }
  0x1e   :  { %v2322_v1 = vld [vmem:[%s3153_s20 + $0x4] ss:$8 sps:$4 sm:$0xff]   ;;  %v2324_v2 = vld [vmem:[%s3153_s20] ss:$8 sps:$4 sm:$0xff]   ;;  %v2325_v3 = vld [vmem:[%s3153_s20 + $0x14] ss:$8 sps:$4 sm:$0xff]   ;;  %v409_v42 = vcombine.high %v2026_v40, %v2026_v40 }
  0x1f   :  { %186 = vmatprep.subr.bf16.mxu0 %v2322_v1  ;;  %v2327_v4 = vld [vmem:[%s3153_s20 + $0x10] ss:$8 sps:$4 sm:$0xff]   ;;  %v2328_v5 = vld [vmem:[%s3153_s20 + $0x24] ss:$8 sps:$4 sm:$0xff]   ;;  %v2330_v6 = vld [vmem:[%s3153_s20 + $0x20] ss:$8 sps:$4 sm:$0xff]   ;;  %2126 = vmatpush3.bf16.msra.mxu1 %v2350_v15  ;;  %v2775_v43 = vsub.s32 %v412_v38, %v414_v39 }
  0x20   :  { %187 = vmatpush1.bf16.msra.mxu0 %v2324_v2  ;;  %v2331_v7 = vld [vmem:[%s3153_s20 + $0x34] ss:$8 sps:$4 sm:$0xff]   ;;  %v2333_v8 = vld [vmem:[%s3153_s20 + $0x30] ss:$8 sps:$4 sm:$0xff]   ;;  %v2334_v9 = vld [vmem:[%s3153_s20 + $0x44] ss:$8 sps:$4 sm:$0xff]   ;;  %2127 = vmatprep.subr.bf16.mxu1 %v2351_v16 }
  0x21   :  { %188 = vmatprep.subr.bf16.mxu0 %v2325_v3  ;;  %v2336_v11 = vld [vmem:[%s3153_s20 + $0x40] ss:$8 sps:$4 sm:$0xff]   ;;  %v2337_v13 = vld [vmem:[%s3153_s20 + $0x54] ss:$8 sps:$4 sm:$0xff]   ;;  %v2339_v17 = vld [vmem:[%s3153_s20 + $0x50] ss:$8 sps:$4 sm:$0xff]   ;;  %v423_v49 = vrot.slane %v409_v42, %v2775_v43  ;;  %v416_v50 = vrot.slane %v2026_v40, %v2775_v43 }
  0x22   :  { %v2340_v18 = vld [vmem:[%s3153_s20 + $0x64] ss:$8 sps:$4 sm:$0xff]   ;;  %v2342_v21 = vld [vmem:[%s3153_s20 + $0x60] ss:$8 sps:$4 sm:$0xff]   ;;  %v2343_v22 = vld [vmem:[%s3153_s20 + $0x74] ss:$8 sps:$4 sm:$0xff]  }
  0x23   :  { %2128 = vmatpush3.bf16.msra.mxu1 %v2352_v19  ;;  %v2345_v25 = vld [vmem:[%s3153_s20 + $0x70] ss:$8 sps:$4 sm:$0xff]   ;;  %v2346_v28 = vld [vmem:[%s3154_s3] sm:$0xff]   ;;  %s3156_s20 = sld [smem:[#allocation10_spill]]  ;;  %vm1931_vm9 = vcmask 261120   ;;  %vm1976_vm10 = vcmask 58368  }
  0x24   :  { %189 = vmatpush1.bf16.msra.mxu0 %v2327_v4  ;;  %2129 = vmatprep.subr.bf16.mxu1 %v2353_v20 }
  0x25   :  { %190 = vmatprep.subr.bf16.mxu0 %v2328_v5  ;;  %v2120_v5 = vld [vmem:[%s3155_s23] sm:$0xff]  }
  0x26   :  { %v2791_v10 = vunpack.c.l.bf16 %v2120_v5  ;;  %v2794_v20 = vunpack.c.h.bf16 %v2120_v5 }
  0x27   :  { %2130 = vmatpush3.bf16.msra.mxu1 %v2354_v23 }
  0x28   :  { %191 = vmatpush1.bf16.msra.mxu0 %v2330_v6  ;;  %2131 = vmatprep.subr.bf16.mxu1 %v2355_v24 }
  0x29   :  { %192 = vmatprep.subr.bf16.mxu0 %v2331_v7 }
  0x2b   :  { %2132 = vmatpush3.bf16.msra.mxu1 %v2356_v26 }
  0x2c   :  { %193 = vmatpush1.bf16.msra.mxu0 %v2333_v8  ;;  %2133 = vmatprep.subr.bf16.mxu1 %v2357_v27 }
  0x2d   :  { %194 = vmatprep.subr.bf16.mxu0 %v2334_v9 }
  0x2f   :  { %2134 = vmatpush3.bf16.msra.mxu1 %v2358_v29 }
  0x30   :  { %195 = vmatpush1.bf16.msra.mxu0 %v2336_v11  ;;  %2135 = vmatprep.subr.bf16.mxu1 %v2359_v30 }
  0x31   :  { %196 = vmatprep.subr.bf16.mxu0 %v2337_v13 }
  0x33   :  { %2136 = vmatpush3.bf16.msra.mxu1 %v2360_v31 }
  0x34   :  { %197 = vmatpush1.bf16.msra.mxu0 %v2339_v17  ;;  %2137 = vmatprep.subr.bf16.mxu1 %v2361_v32 }
  0x35   :  { %198 = vmatprep.subr.bf16.mxu0 %v2340_v18 }
  0x37   :  { %2138 = vmatpush3.bf16.msra.mxu1 %v2362_v33 }
  0x38   :  { %199 = vmatpush1.bf16.msra.mxu0 %v2342_v21 }
  0x39   :  { %200 = vmatprep.subr.bf16.mxu0 %v2343_v22 }
  0x3c   :  { %201 = vmatpush1.bf16.msra.mxu0 %v2345_v25 }
  0x3d   :  { %2228 = vmatprep.subr.bf16.mxu0 %v2553_v34 }
  0x3f   :  { %219 = vmatmul.mubr.bf16.vlgmr.msra.gmra.mrb[0].mxu0 %v2346_v28 }
  0x40   :  { %2230 = vmatprep.mubr.msk.bf16.mxu0 %vm2556_vm1, %v2553_v34 }
 0x112   :  { %v220_v41 = vpop.f32.mrb[0].mxu0 }
 0x113   :  { %v222_v44 = vpop.f32.mrb[1].mxu0 }
 0x114   :  { %v224_v45 = vpop.f32.mrb[2].mxu0 }
 0x115   :  { %v229_v46 = vpack.c.bf16 %v224_v45, %v220_v41  ;;  %v226_v47 = vpop.f32.mrb[3].mxu0 }
 0x116   :  { %v230_v48 = vpack.c.bf16 %v226_v47, %v222_v44 }
 0x118   :  { %391 = vmatprep.mubr.bf16.mxu1 %v230_v48  ;;  %426 = vmatprep.subr.bf16.mxu1 %v230_v48 }
 0x119   :  { %2229 = vmatpush3.bf16.msra.mxu0 %v230_v48  ;;  %392 = vmatmul.mubr.bf16.vlgmr.msra.gmra.mrb[0].mxu1 %v229_v46 }
 0x11a   :  { %427 = vmatpush1.bf16.xpose.msra.mxu1 %v229_v46  ;;  %458 = vmatprep.mubr.bf16.mxu1 %v423_v49 }
 0x11b   :  { %2222 = vmatprep.subr.bf16.mxu1 %v2553_v34 }
 0x121   :  { %459 = vmatmul.mubr.bf16.vlgmr.msra.gmra.mrb[4].mxu1 %v416_v50 }
 0x122   :  { %2223 = vmatpush3.bf16.msra.mxu1 %v229_v46  ;;  %2224 = vmatprep.mubr.msk.bf16.mxu1 %vm2556_vm1, %v2553_v34 }
 0x1ec   :  { %v2139_v52 = vpop.f32.mrb[0].mxu1 }
 0x1ed   :  { %v2140_v53 = vpop.f32.mrb[1].mxu1 }
 0x1ee   :  { %v2141_v54 = vadd.f32 %v2140_v53, %v2139_v52  ;;  %v2142_v55 = vpop.f32.mrb[2].mxu1  ;;  %v2365_v53 = vld [vmem:[%s3134_s7 + $0x4] ss:$8 sps:$4 sm:$0xff]  }
 0x1ef   :  { %v2143_v56 = vpop.f32.mrb[3].mxu1  ;;  %857 = vmatprep.subr.bf16.mxu1 %v2365_v53  ;;  %v2421_v53 = vld [vmem:[%s3135_s8 + $0x68] sm:$0xff]  }
 0x1f0   :  { %v2144_v57 = vadd.f32 %v2143_v56, %v2142_v55  ;;  %468 = vperm.xlu1 %2316, %v2141_v54   ;;  %557 = vperm.xlu0 %2315, %v2141_v54  }
 0x1f4   :  { %473 = vperm.xlu1 %2316, %v2144_v57   ;;  %561 = vperm.xlu0 %2315, %v2144_v57   ;;  %v460_v58 = vpop.f32.mrb[4].mxu1 }
 0x1f5   :  { %v462_v59 = vpop.f32.mrb[5].mxu1  ;;  %v479_v1 = vrot.slane %v460_v58, %v2782_v62  ;;  %v567_v2 = vrot.slane %v460_v58, %v2784_v63 }
 0x1f6   :  { %v463_v60 = vpop.f32.mrb[6].mxu1 }
 0x1f7   :  { %v464_v61 = vpop.f32.mrb[7].mxu1 }
 0x1f8   :  { %2317 = vset.pattern.permute.xlu0 %v2552_v0 }
 0x26f   :  { %v469_v3 = vpop.permute.xlu1 %468  ;;  %v558_v4 = vpop.permute.xlu0 %557 }
 0x270   :  { %v480_v6 = vadd.f32 %v479_v1, %v469_v3  ;;  %v568_v7 = vadd.f32 %v567_v2, %v558_v4 }
 0x272   :  { %v482_v8 = vmul.f32 0.2, %v480_v6  ;;  %v570_v9 = vmul.f32 0.2, %v568_v7 }
 0x273   :  { %v474_v11 = vpop.permute.xlu1 %473  ;;  %v562_v12 = vpop.permute.xlu0 %561 }
 0x274   :  { %v484_v13 = vmax.f32 %v480_v6, %v482_v8  ;;  %v572_v14 = vmax.f32 %v568_v7, %v570_v9  ;;  %v481_v15 = vadd.f32 %v479_v1, %v474_v11  ;;  %v569_v16 = vadd.f32 %v567_v2, %v562_v12  ;;  %v2363_v6 = vld [vmem:[%s3134_s7] ss:$8 sps:$4 sm:$0xff]   ;;  %v2368_v8 = vld [vmem:[%s3134_s7 + $0x14] ss:$8 sps:$4 sm:$0xff]   ;;  %v2366_v9 = vld [vmem:[%s3134_s7 + $0x10] ss:$8 sps:$4 sm:$0xff]  }
 0x275   :  { %v2371_v11 = vld [vmem:[%s3134_s7 + $0x24] ss:$8 sps:$4 sm:$0xff]   ;;  %v2369_v12 = vld [vmem:[%s3134_s7 + $0x20] ss:$8 sps:$4 sm:$0xff]  }
 0x276   :  { %v483_v17 = vmul.f32 0.2, %v481_v15  ;;  %v571_v18 = vmul.f32 0.2, %v569_v16  ;;  %v574_v19 = vadd.f32 %v2791_v10, %v572_v14  ;;  %v486_v24 = vadd.f32 %v2791_v10, %v484_v13  ;;  %v2374_v13 = vld [vmem:[%s3134_s7 + $0x34] ss:$8 sps:$4 sm:$0xff]  }
 0x277   :  { %v2372_v14 = vld [vmem:[%s3134_s7 + $0x30] ss:$8 sps:$4 sm:$0xff]  }
 0x278   :  { %v485_v21 = vmax.f32 %v481_v15, %v483_v17  ;;  %v573_v22 = vmax.f32 %v569_v16, %v571_v18  ;;  %v576_v23 = vsel %vm488_vm0, %v574_v19, -inf  ;;  %v489_v27 = vsel %vm488_vm0, %v486_v24, -inf  ;;  %v2377_v15 = vld [vmem:[%s3134_s7 + $0x44] ss:$8 sps:$4 sm:$0xff]   ;;  %v2375_v16 = vld [vmem:[%s3134_s7 + $0x40] ss:$8 sps:$4 sm:$0xff]  }
 0x279   :  { %577 = vmax.xlane.f32.xlu0 %v576_v23  ;;  %v2380_v17 = vld [vmem:[%s3134_s7 + $0x54] ss:$8 sps:$4 sm:$0xff]   ;;  %v2378_v18 = vld [vmem:[%s3134_s7 + $0x50] ss:$8 sps:$4 sm:$0xff]  }
 0x27a   :  { %v575_v25 = vadd.f32 %v2794_v20, %v573_v22  ;;  %v487_v28 = vadd.f32 %v2794_v20, %v485_v21  ;;  %v2381_v21 = vld [vmem:[%s3134_s7 + $0x60] ss:$8 sps:$4 sm:$0xff]   ;;  %v2386_v22 = vld [vmem:[%s3134_s7 + $0x74] ss:$8 sps:$4 sm:$0xff]   ;;  %v2384_v23 = vld [vmem:[%s3134_s7 + $0x70] ss:$8 sps:$4 sm:$0xff]  }
 0x27c   :  { %v579_v26 = vsel %vm488_vm0, %v575_v25, -inf  ;;  %v492_v29 = vsel %vm488_vm0, %v487_v28, -inf }
 0x27d   :  { %580 = vmax.xlane.f32.xlu1 %v579_v26  ;;  %490 = vmax.xlane.f32.xlu0 %v489_v27  ;;  %v2392_v26 = vld [vmem:[%s3134_s7 + $0x94] ss:$8 sps:$4 sm:$0xff]   ;;  %v2390_v27 = vld [vmem:[%s3134_s7 + $0x90] ss:$8 sps:$4 sm:$0xff]  }
 0x281   :  { %493 = vmax.xlane.f32.xlu0 %v492_v29  ;;  %v2393_v29 = vld [vmem:[%s3134_s7 + $0xa0] ss:$8 sps:$4 sm:$0xff]  }
 0x306   :  { %v578_v30 = vpop.xlane.xlu0 %577 }
 0x307   :  { %v582_v31 = vsub.f32 %v574_v19, %v578_v30  ;;  %v2383_v19 = vld [vmem:[%s3134_s7 + $0x64] ss:$8 sps:$4 sm:$0xff]   ;;  %v2398_v30 = vld [vmem:[%s3134_s7 + $0xb4] ss:$8 sps:$4 sm:$0xff]  }
 0x309   :  { %v584_v32 = vmul.f32 1.442695, %v582_v31  ;;  %v2396_v31 = vld [vmem:[%s3134_s7 + $0xb0] ss:$8 sps:$4 sm:$0xff]  }
 0x30a   :  { %v581_v33 = vpop.xlane.xlu1 %580  ;;  %v491_v35 = vpop.xlane.xlu0 %490 }
 0x30b   :  { %2461 = vpow2.f32 %v584_v32  ;;  %v583_v36 = vsub.f32 %v575_v25, %v581_v33  ;;  %v495_v37 = vsub.f32 %v486_v24, %v491_v35  ;;  %v2389_v24 = vld [vmem:[%s3134_s7 + $0x84] ss:$8 sps:$4 sm:$0xff]   ;;  %v2387_v25 = vld [vmem:[%s3134_s7 + $0x80] ss:$8 sps:$4 sm:$0xff]   ;;  %v2404_v35 = vld [vmem:[%s3134_s7 + $0xd4] ss:$8 sps:$4 sm:$0xff]  }
 0x30c   :  { %v2401_v32 = vld [vmem:[%s3134_s7 + $0xc4] ss:$8 sps:$4 sm:$0xff]   ;;  %v2399_v33 = vld [vmem:[%s3134_s7 + $0xc0] ss:$8 sps:$4 sm:$0xff]  }
 0x30d   :  { %v586_v38 = vmul.f32 1.442695, %v583_v36  ;;  %v497_v39 = vmul.f32 1.442695, %v495_v37  ;;  %v2402_v36 = vld [vmem:[%s3134_s7 + $0xd0] ss:$8 sps:$4 sm:$0xff]  }
 0x30e   :  { %v494_v40 = vpop.xlane.xlu0 %493  ;;  %v2407_v37 = vld [vmem:[%s3134_s7 + $0xe4] ss:$8 sps:$4 sm:$0xff]  }
 0x30f   :  { %2463 = vpow2.f32 %v586_v38  ;;  %v496_v41 = vsub.f32 %v487_v28, %v494_v40  ;;  %v2395_v28 = vld [vmem:[%s3134_s7 + $0xa4] ss:$8 sps:$4 sm:$0xff]   ;;  %v2405_v38 = vld [vmem:[%s3134_s7 + $0xe0] ss:$8 sps:$4 sm:$0xff]   ;;  %v2408_v40 = vld [vmem:[%s3134_s7 + $0xf0] ss:$8 sps:$4 sm:$0xff]  }
 0x310   :  { %2465 = vpow2.f32 %v497_v39  ;;  %v2410_v39 = vld [vmem:[%s3134_s7 + $0xf4] ss:$8 sps:$4 sm:$0xff]  }
 0x311   :  { %v499_v42 = vmul.f32 1.442695, %v496_v41  ;;  %v2411_v41 = vld [vmem:[%s3135_s8 + $0x40] sm:$0xff]  }
 0x312   :  { %2149 = vmatprep.subr.bf16.mxu0 %v2411_v41 }
 0x313   :  { %2467 = vpow2.f32 %v499_v42  ;;  %v2412_v42 = vld [vmem:[%s3135_s8] sm:$0xff]  }
 0x315   :  { %v2462_v44 = vpop.eup %2461 }
 0x316   :  { %v588_v45 = vsel %vm488_vm0, %v2462_v44, 0.0 }
 0x317   :  { %589 = vadd.xlane.f32.xlu1 %v588_v45  ;;  %v2414_v45 = vld [vmem:[%s3135_s8 + $0x8] sm:$0xff]  }
 0x319   :  { %v2464_v46 = vpop.eup %2463 }
 0x31a   :  { %v2466_v47 = vpop.eup %2465  ;;  %v591_v48 = vsel %vm488_vm0, %v2464_v46, 0.0 }
 0x31b   :  { %592 = vadd.xlane.f32.xlu0 %v591_v48  ;;  %v501_v49 = vsel %vm488_vm0, %v2466_v47, 0.0  ;;  %v2417_v48 = vld [vmem:[%s3135_s8 + $0x58] sm:$0xff]  }
 0x31c   :  { %502 = vadd.xlane.f32.xlu1 %v501_v49  ;;  %v2418_v49 = vld [vmem:[%s3135_s8 + $0x18] sm:$0xff]  }
 0x31d   :  { %v2468_v50 = vpop.eup %2467 }
 0x31e   :  { %v504_v52 = vsel %vm488_vm0, %v2468_v50, 0.0 }
 0x31f   :  { %505 = vadd.xlane.f32.xlu0 %v504_v52  ;;  %v2420_v52 = vld [vmem:[%s3135_s8 + $0x20] sm:$0xff]  }
 0x3a4   :  { %v590_v54 = vpop.xlane.xlu1 %589 }
 0x3a5   :  { %2469 = vrcp.f32 %v590_v54  ;;  %v2422_v54 = vld [vmem:[%s3135_s8 + $0x28] sm:$0xff]  }
 0x3a8   :  { %v593_v55 = vpop.xlane.xlu0 %592 }
 0x3a9   :  { %v503_v56 = vpop.xlane.xlu1 %502  ;;  %2471 = vrcp.f32 %v593_v55  ;;  %v2423_v55 = vld [vmem:[%s3135_s8 + $0x70] sm:$0xff]  }
 0x3aa   :  { %2473 = vrcp.f32 %v503_v56  ;;  %v2424_v56 = vld [vmem:[%s3135_s8 + $0x30] sm:$0xff]  }
 0x3ac   :  { %v506_v57 = vpop.xlane.xlu0 %505 }
 0x3ad   :  { %2475 = vrcp.f32 %v506_v57  ;;  %v2425_v57 = vld [vmem:[%s3135_s8 + $0x78] sm:$0xff]  }
 0x3af   :  { %v2470_v58 = vpop.eup %2469 }
 0x3b0   :  { %v596_v60 = vmul.f32 %v2470_v58, %v2462_v44  ;;  %v2413_v44 = vld [vmem:[%s3135_s8 + $0x48] sm:$0xff]   ;;  %v2426_v58 = vld [vmem:[%s3135_s8 + $0x38] sm:$0xff]  }
 0x3b3   :  { %v2472_v59 = vpop.eup %2471 }
 0x3b4   :  { %v597_v61 = vmul.f32 %v2472_v59, %v2464_v46  ;;  %v2474_v1 = vpop.eup %2473  ;;  %v2415_v46 = vld [vmem:[%s3135_s8 + $0x50] sm:$0xff]   ;;  %v643_v59 = vld [vmem:[%s3133_s6] sm:$0x3] }
 0x3b5   :  { %v509_v4 = vmul.f32 %v2474_v1, %v2466_v47  ;;  %v2416_v47 = vld [vmem:[%s3135_s8 + $0x10] sm:$0xff]  }
 0x3b6   :  { %v598_v2 = vpack.c.bf16 %v597_v61, %v596_v60  ;;  %v652_v60 = vrot.slane %v643_v59, %v2784_v63 }
 0x3b7   :  { %v2476_v3 = vpop.eup %2475 }
 0x3b8   :  { %v510_v5 = vmul.f32 %v2476_v3, %v2468_v50  ;;  %2231 = vmatmul.mubr.msk.bf16.vlgmr.msra.gmra.mrb[4].mxu0 %vm488_vm0, %v598_v2  ;;  %v2419_v50 = vld [vmem:[%s3135_s8 + $0x60] sm:$0xff]   ;;  %v648_v3 = vrot.slane %v643_v59, %v2782_v62 }
 0x3b9   :  { %2150 = vmatpush3.bf16.msra.mxu0 %v2412_v42 }
 0x3ba   :  { %v511_v7 = vpack.c.bf16 %v510_v5, %v509_v4  ;;  %2151 = vmatprep.subr.bf16.mxu0 %v2413_v44 }
 0x3bc   :  { %2225 = vmatmul.mubr.msk.bf16.vlgmr.msra.gmra.mrb[8].mxu1 %vm488_vm0, %v511_v7 }
 0x3bd   :  { %858 = vmatpush1.bf16.msra.mxu1 %v2363_v6  ;;  %2152 = vmatpush3.bf16.msra.mxu0 %v2414_v45 }
 0x3be   :  { %859 = vmatprep.subr.bf16.mxu1 %v2368_v8  ;;  %2153 = vmatprep.subr.bf16.mxu0 %v2415_v46 }
 0x3c1   :  { %860 = vmatpush1.bf16.msra.mxu1 %v2366_v9  ;;  %2154 = vmatpush3.bf16.msra.mxu0 %v2416_v47 }
 0x3c2   :  { %861 = vmatprep.subr.bf16.mxu1 %v2371_v11  ;;  %2155 = vmatprep.subr.bf16.mxu0 %v2417_v48 }
 0x3c5   :  { %862 = vmatpush1.bf16.msra.mxu1 %v2369_v12  ;;  %2156 = vmatpush3.bf16.msra.mxu0 %v2418_v49 }
 0x3c6   :  { %863 = vmatprep.subr.bf16.mxu1 %v2374_v13  ;;  %2157 = vmatprep.subr.bf16.mxu0 %v2419_v50 }
 0x3c9   :  { %864 = vmatpush1.bf16.msra.mxu1 %v2372_v14  ;;  %2158 = vmatpush3.bf16.msra.mxu0 %v2420_v52 }
 0x3ca   :  { %865 = vmatprep.subr.bf16.mxu1 %v2377_v15  ;;  %2159 = vmatprep.subr.bf16.mxu0 %v2421_v53 }
 0x3cd   :  { %866 = vmatpush1.bf16.msra.mxu1 %v2375_v16  ;;  %2160 = vmatpush3.bf16.msra.mxu0 %v2422_v54 }
 0x3ce   :  { %867 = vmatprep.subr.bf16.mxu1 %v2380_v17  ;;  %2161 = vmatprep.subr.bf16.mxu0 %v2423_v55 }
 0x3d1   :  { %868 = vmatpush1.bf16.msra.mxu1 %v2378_v18  ;;  %2162 = vmatpush3.bf16.msra.mxu0 %v2424_v56 }
 0x3d2   :  { %869 = vmatprep.subr.bf16.mxu1 %v2383_v19  ;;  %2163 = vmatprep.subr.bf16.mxu0 %v2425_v57 }
 0x3d5   :  { %870 = vmatpush1.bf16.msra.mxu1 %v2381_v21  ;;  %2164 = vmatpush3.bf16.msra.mxu0 %v2426_v58  ;;  %v2077_v21 = vld.sshfl [vmem:[%s3136_s9] sm:$0x11 pattern:$0x75316420] }
 0x3d6   :  { %871 = vmatprep.subr.bf16.mxu1 %v2386_v22 }
 0x3d9   :  { %872 = vmatpush1.bf16.msra.mxu1 %v2384_v23  ;;  %v1080_v23 = vcombine.high %v2077_v21, %v2077_v21 }
 0x3da   :  { %873 = vmatprep.subr.bf16.mxu1 %v2389_v24 }
 0x3dd   :  { %874 = vmatpush1.bf16.msra.mxu1 %v2387_v25 }
 0x3de   :  { %875 = vmatprep.subr.bf16.mxu1 %v2392_v26 }
 0x3e1   :  { %876 = vmatpush1.bf16.msra.mxu1 %v2390_v27 }
 0x3e2   :  { %877 = vmatprep.subr.bf16.mxu1 %v2395_v28 }
 0x3e5   :  { %878 = vmatpush1.bf16.msra.mxu1 %v2393_v29  ;;  %v1094_v29 = vrot.slane %v1080_v23, %v2775_v43 }
 0x3e6   :  { %879 = vmatprep.subr.bf16.mxu1 %v2398_v30  ;;  %v1087_v30 = vrot.slane %v2077_v21, %v2775_v43 }
 0x3e9   :  { %880 = vmatpush1.bf16.msra.mxu1 %v2396_v31 }
 0x3ea   :  { %881 = vmatprep.subr.bf16.mxu1 %v2401_v32 }
 0x3ed   :  { %882 = vmatpush1.bf16.msra.mxu1 %v2399_v33 }
 0x3ee   :  { %883 = vmatprep.subr.bf16.mxu1 %v2404_v35 }
 0x3f1   :  { %884 = vmatpush1.bf16.msra.mxu1 %v2402_v36 }
 0x3f2   :  { %885 = vmatprep.subr.bf16.mxu1 %v2407_v37 }
 0x3f5   :  { %886 = vmatpush1.bf16.msra.mxu1 %v2405_v38 }
 0x3f6   :  { %887 = vmatprep.subr.bf16.mxu1 %v2410_v39 }
 0x3f9   :  { %888 = vmatpush1.bf16.msra.mxu1 %v2408_v40 }
 0x3fa   :  { %2246 = vmatprep.subr.bf16.mxu1 %v2553_v34 }
 0x48b   :  { %v636_v61 = vpop.f32.mrb[4].mxu0 }
 0x48c   :  { %v656_v1 = vadd.f32 %v652_v60, %v636_v61  ;;  %v2232_v2 = vpop.f32.mrb[5].mxu0 }
 0x48d   :  { %v639_v4 = vpop.f32.mrb[6].mxu0 }
 0x48e   :  { %v658_v5 = vadd.f32 %v652_v60, %v639_v4  ;;  %v2233_v6 = vpop.f32.mrb[7].mxu0  ;;  %v660_v8 = vmax.f32 %v656_v1, 0.0 }
 0x48f   :  { %v549_v7 = vpop.f32.mrb[8].mxu1 }
 0x490   :  { %v662_v9 = vmax.f32 %v658_v5, 0.0  ;;  %v655_v11 = vadd.f32 %v648_v3, %v549_v7  ;;  %v2226_v12 = vpop.f32.mrb[9].mxu1 }
 0x491   :  { %v552_v13 = vpop.f32.mrb[10].mxu1 }
 0x492   :  { %v664_v14 = vpack.c.bf16 %v662_v9, %v660_v8  ;;  %v657_v15 = vadd.f32 %v648_v3, %v552_v13  ;;  %v2227_v16 = vpop.f32.mrb[11].mxu1  ;;  %v659_v17 = vmax.f32 %v655_v11, 0.0 }
 0x494   :  { %v661_v18 = vmax.f32 %v657_v15, 0.0  ;;  %889 = vmatprep.mubr.bf16.mxu1 %v664_v14 }
 0x496   :  { %v663_v19 = vpack.c.bf16 %v661_v18, %v659_v17 }
 0x498   :  { %890 = vmatmul.mubr.bf16.vlgmr.msra.gmra.mrb[12].mxu1 %v663_v19 }
 0x499   :  { %2262 = vmatprep.mubr.msk.bf16.mxu1 %vm2556_vm1, %v2553_v34 }
 0x56b   :  { %v891_v22 = vpop.f32.mrb[12].mxu1 }
 0x56c   :  { %v893_v24 = vpop.f32.mrb[13].mxu1 }
 0x56d   :  { %v895_v25 = vpop.f32.mrb[14].mxu1 }
 0x56e   :  { %v900_v26 = vpack.c.bf16 %v895_v25, %v891_v22  ;;  %v897_v27 = vpop.f32.mrb[15].mxu1 }
 0x56f   :  { %v2968_v28 = vpack.c.bf16 %v897_v27, %v893_v24 }
 0x571   :  { %1062 = vmatprep.mubr.bf16.mxu0 %v2968_v28  ;;  %1097 = vmatprep.subr.bf16.mxu0 %v2968_v28 }
 0x572   :  { %1063 = vmatmul.mubr.bf16.vlgmr.msra.gmra.mrb[8].mxu0 %v900_v26 }
 0x573   :  { %1098 = vmatpush1.bf16.xpose.msra.mxu0 %v900_v26  ;;  %1129 = vmatprep.mubr.bf16.mxu0 %v1094_v29 }
 0x574   :  { %2234 = vmatprep.subr.bf16.mxu0 %v2553_v34 }
 0x57a   :  { %1130 = vmatmul.mubr.bf16.vlgmr.msra.gmra.mrb[12].mxu0 %v1087_v30 }
 0x57b   :  { %2235 = vmatpush3.bf16.msra.mxu0 %v900_v26  ;;  %2236 = vmatprep.mubr.msk.bf16.mxu0 %vm2556_vm1, %v2553_v34 }
 0x57c   :  { %2240 = vmatprep.subr.bf16.mxu0 %v2553_v34 }
 0x645   :  { %v2165_v31 = vpop.f32.mrb[8].mxu0 }
 0x646   :  { %v2166_v32 = vpop.f32.mrb[9].mxu0 }
 0x647   :  { %v2167_v33 = vadd.f32 %v2166_v32, %v2165_v31  ;;  %v2168_v35 = vpop.f32.mrb[10].mxu0 }
 0x648   :  { %v2169_v36 = vpop.f32.mrb[11].mxu0 }
 0x649   :  { %v2170_v37 = vadd.f32 %v2169_v36, %v2168_v35  ;;  %1139 = vperm.xlu1 %2316, %v2167_v33  }
 0x64b   :  { %1144 = vperm.xlu0 %2317, %v2170_v37  }
 0x64d   :  { %2318 = vset.pattern.permute.xlu1 %v2555_v51  ;;  %v1131_v38 = vpop.f32.mrb[12].mxu0 }
 0x64e   :  { %1227 = vperm.xlu1 %2318, %v2167_v33   ;;  %v1133_v43 = vpop.f32.mrb[13].mxu0  ;;  %v1150_v41 = vrot.slane %v1131_v38, %v2782_v62  ;;  %v1237_v48 = vrot.slane %v1131_v38, %v2784_v63 }
 0x64f   :  { %v1134_v39 = vpop.f32.mrb[14].mxu0 }
 0x650   :  { %v1135_v40 = vpop.f32.mrb[15].mxu0 }
 0x651   :  { %v2427_v40 = vld [vmem:[#allocation2 + $0x40] sm:$0xff]  }
 0x652   :  { %1231 = vperm.xlu1 %2318, %v2170_v37  }
 0x656   :  { %2319 = vset.pattern.permute.xlu1 %v2552_v0 }
 0x6c8   :  { %v1140_v42 = vpop.permute.xlu1 %1139 }
 0x6c9   :  { %v1151_v44 = vadd.f32 %v1150_v41, %v1140_v42 }
 0x6ca   :  { %v1145_v45 = vpop.permute.xlu0 %1144 }
 0x6cb   :  { %v1153_v46 = vmul.f32 0.2, %v1151_v44  ;;  %v1152_v47 = vadd.f32 %v1150_v41, %v1145_v45 }
 0x6cd   :  { %v1155_v49 = vmax.f32 %v1151_v44, %v1153_v46  ;;  %v1154_v50 = vmul.f32 0.2, %v1152_v47  ;;  %v1228_v52 = vpop.permute.xlu1 %1227  ;;  %v2428_v46 = vld [vmem:[#allocation2] sm:$0xff]  }
 0x6ce   :  { %v1238_v53 = vadd.f32 %v1237_v48, %v1228_v52  ;;  %v2432_v52 = vld [vmem:[#allocation2 + $0x10] sm:$0xff]  }
 0x6cf   :  { %v1156_v54 = vmax.f32 %v1152_v47, %v1154_v50  ;;  %v1157_v55 = vadd.f32 %v2791_v10, %v1155_v49  ;;  %v2430_v49 = vld [vmem:[#allocation2 + $0x8] sm:$0xff]   ;;  %v2431_v50 = vld [vmem:[#allocation2 + $0x50] sm:$0xff]  }
 0x6d0   :  { %v1240_v56 = vmul.f32 0.2, %v1238_v53 }
 0x6d1   :  { %v1232_v57 = vpop.permute.xlu1 %1231  ;;  %v1159_v58 = vsel %vm488_vm0, %v1157_v55, -inf  ;;  %v1158_v59 = vadd.f32 %v2794_v20, %v1156_v54  ;;  %v2435_v54 = vld [vmem:[#allocation2 + $0x60] sm:$0xff]  }
 0x6d2   :  { %v1242_v60 = vmax.f32 %v1238_v53, %v1240_v56  ;;  %v1239_v61 = vadd.f32 %v1237_v48, %v1232_v57  ;;  %1160 = vmax.xlane.f32.xlu1 %v1159_v58  ;;  %v2429_v48 = vld [vmem:[#allocation2 + $0x48] sm:$0xff]   ;;  %v2433_v53 = vld [vmem:[#allocation2 + $0x58] sm:$0xff]   ;;  %v2439_v58 = vld [vmem:[#allocation2 + $0x70] sm:$0xff]  }
 0x6d3   :  { %v1162_v1 = vsel %vm488_vm0, %v1158_v59, -inf  ;;  %v2437_v56 = vld [vmem:[#allocation2 + $0x68] sm:$0xff]  }
 0x6d4   :  { %v1241_v2 = vmul.f32 0.2, %v1239_v61  ;;  %1163 = vmax.xlane.f32.xlu0 %v1162_v1  ;;  %v1244_v3 = vadd.f32 %v2791_v10, %v1242_v60  ;;  %v2438_v57 = vld [vmem:[#allocation2 + $0x28] sm:$0xff]   ;;  %v2441_v60 = vld [vmem:[#allocation2 + $0x78] sm:$0xff]   ;;  %v2443_v1 = vld [vmem:[%s3139_s12] sm:$0xff]  }
 0x6d5   :  { %2247 = vmatpush3.bf16.msra.mxu1 %v2443_v1 }
 0x6d6   :  { %v1243_v4 = vmax.f32 %v1239_v61, %v1241_v2  ;;  %v1246_v5 = vsel %vm488_vm0, %v1244_v3, -inf  ;;  %v2442_v61 = vld [vmem:[#allocation2 + $0x38] sm:$0xff]   ;;  %v2444_v2 = vld [vmem:[%s3139_s12 + $0x8] sm:$0xff]   ;;  %2248 = vmatprep.subr.bf16.mxu1 %v2553_v34 }
 0x6d7   :  { %1247 = vmax.xlane.f32.xlu1 %v1246_v5  ;;  %v2447_v5 = vld [vmem:[%s3139_s12 + $0x20] sm:$0xff]  }
 0x6d8   :  { %v1245_v6 = vadd.f32 %v2794_v20, %v1243_v4  ;;  %v2446_v4 = vld [vmem:[%s3139_s12 + $0x18] sm:$0xff]  }
 0x6d9   :  { %2249 = vmatpush3.bf16.msra.mxu1 %v2444_v2 }
 0x6da   :  { %v1249_v7 = vsel %vm488_vm0, %v1245_v6, -inf  ;;  %2250 = vmatprep.subr.bf16.mxu1 %v2553_v34 }
 0x6db   :  { %1250 = vmax.xlane.f32.xlu1 %v1249_v7  ;;  %v1313_v7 = vld [vmem:[%s3137_s10] sm:$0x3] }
 0x75f   :  { %v1161_v8 = vpop.xlane.xlu1 %1160 }
 0x760   :  { %v1165_v9 = vsub.f32 %v1157_v55, %v1161_v8  ;;  %v2436_v55 = vld [vmem:[#allocation2 + $0x20] sm:$0xff]   ;;  %v1318_v8 = vrot.slane %v1313_v7, %v2782_v62 }
 0x761   :  { %v1164_v11 = vpop.xlane.xlu0 %1163 }
 0x762   :  { %v1167_v12 = vmul.f32 1.442695, %v1165_v9  ;;  %v1166_v13 = vsub.f32 %v1158_v59, %v1164_v11  ;;  %v2440_v59 = vld [vmem:[#allocation2 + $0x30] sm:$0xff]  }
 0x764   :  { %2477 = vpow2.f32 %v1167_v12  ;;  %v1169_v14 = vmul.f32 1.442695, %v1166_v13  ;;  %v1248_v15 = vpop.xlane.xlu1 %1247 }
 0x765   :  { %v1252_v16 = vsub.f32 %v1244_v3, %v1248_v15  ;;  %v2445_v3 = vld [vmem:[%s3139_s12 + $0x10] sm:$0xff]  }
 0x766   :  { %2479 = vpow2.f32 %v1169_v14  ;;  %2251 = vmatpush3.bf16.msra.mxu1 %v2445_v3 }
 0x767   :  { %v1254_v17 = vmul.f32 1.442695, %v1252_v16  ;;  %2252 = vmatprep.subr.bf16.mxu1 %v2553_v34 }
 0x768   :  { %v1251_v18 = vpop.xlane.xlu1 %1250 }
 0x769   :  { %v1253_v19 = vsub.f32 %v1245_v6, %v1251_v18  ;;  %2481 = vpow2.f32 %v1254_v17  ;;  %v2448_v6 = vld [vmem:[%s3139_s12 + $0x28] sm:$0xff]   ;;  %v1322_v18 = vrot.slane %v1313_v7, %v2784_v63  ;;  %v2450_v63 = vld [vmem:[%s3139_s12 + $0x38] sm:$0xff]  }
 0x76a   :  { %2253 = vmatpush3.bf16.msra.mxu1 %v2446_v4 }
 0x76b   :  { %v1256_v21 = vmul.f32 1.442695, %v1253_v19  ;;  %2254 = vmatprep.subr.bf16.mxu1 %v2553_v34 }
 0x76d   :  { %2483 = vpow2.f32 %v1256_v21 }
 0x76e   :  { %v2478_v22 = vpop.eup %2477  ;;  %2255 = vmatpush3.bf16.msra.mxu1 %v2447_v5 }
 0x76f   :  { %v1171_v23 = vsel %vm488_vm0, %v2478_v22, 0.0  ;;  %2256 = vmatprep.subr.bf16.mxu1 %v2553_v34 }
 0x770   :  { %v2480_v24 = vpop.eup %2479  ;;  %1172 = vadd.xlane.f32.xlu1 %v1171_v23 }
 0x771   :  { %v1174_v25 = vsel %vm488_vm0, %v2480_v24, 0.0 }
 0x772   :  { %2257 = vmatpush3.bf16.msra.mxu1 %v2448_v6 }
 0x773   :  { %v2482_v26 = vpop.eup %2481  ;;  %2258 = vmatprep.subr.bf16.mxu1 %v2553_v34 }
 0x774   :  { %1175 = vadd.xlane.f32.xlu1 %v1174_v25  ;;  %v1258_v29 = vsel %vm488_vm0, %v2482_v26, 0.0 }
 0x777   :  { %v2484_v27 = vpop.eup %2483 }
 0x778   :  { %1259 = vadd.xlane.f32.xlu1 %v1258_v29  ;;  %v1261_v30 = vsel %vm488_vm0, %v2484_v27, 0.0 }
 0x779   :  { %1262 = vadd.xlane.f32.xlu0 %v1261_v30 }
 0x7fd   :  { %v1173_v31 = vpop.xlane.xlu1 %1172 }
 0x7fe   :  { %2485 = vrcp.f32 %v1173_v31  ;;  %v2449_v31 = vld [vmem:[%s3139_s12 + $0x30] sm:$0xff]  }
 0x7ff   :  { %2259 = vmatpush3.bf16.msra.mxu1 %v2449_v31 }
 0x800   :  { %2260 = vmatprep.subr.bf16.mxu1 %v2553_v34 }
 0x801   :  { %v1176_v32 = vpop.xlane.xlu1 %1175 }
 0x802   :  { %2487 = vrcp.f32 %v1176_v32 }
 0x803   :  { %2261 = vmatpush3.bf16.msra.mxu1 %v2450_v63 }
 0x804   :  { %2272 = vmatprep.subr.bf16.mxu1 %v2553_v34 }
 0x805   :  { %v1260_v33 = vpop.xlane.xlu1 %1259 }
 0x806   :  { %2489 = vrcp.f32 %v1260_v33  ;;  %v1263_v35 = vpop.xlane.xlu0 %1262 }
 0x807   :  { %2491 = vrcp.f32 %v1263_v35 }
 0x808   :  { %v2486_v36 = vpop.eup %2485 }
 0x809   :  { %v1179_v38 = vmul.f32 %v2486_v36, %v2478_v22 }
 0x80c   :  { %v2488_v37 = vpop.eup %2487 }
 0x80d   :  { %v1180_v43 = vmul.f32 %v2488_v37, %v2480_v24 }
 0x80f   :  { %v1181_v39 = vpack.c.bf16 %v1180_v43, %v1179_v38 }
 0x810   :  { %v2490_v41 = vpop.eup %2489 }
 0x811   :  { %v2492_v42 = vpop.eup %2491  ;;  %2237 = vmatmul.mubr.msk.bf16.vlgmr.msra.gmra.mrb[16].mxu0 %vm488_vm0, %v1181_v39  ;;  %v1266_v44 = vmul.f32 %v2490_v41, %v2482_v26  ;;  %v1610_v39 = vld [vmem:[%s3140_s13] sm:$0x1] }
 0x812   :  { %2241 = vmatpush3.bf16.msra.mxu0 %v2968_v28  ;;  %2242 = vmatprep.mubr.msk.bf16.mxu0 %vm2556_vm1, %v2553_v34  ;;  %v1267_v45 = vmul.f32 %v2492_v42, %v2484_v27  ;;  %v2434_v28 = vld [vmem:[#allocation2 + $0x18] sm:$0xff]  }
 0x813   :  { %2175 = vmatprep.subr.bf16.mxu0 %v2427_v40 }
 0x814   :  { %v1268_v47 = vpack.c.bf16 %v1267_v45, %v1266_v44 }
 0x819   :  { %2243 = vmatmul.mubr.msk.bf16.vlgmr.msra.gmra.mrb[20].mxu0 %vm488_vm0, %v1268_v47 }
 0x81a   :  { %2176 = vmatpush3.bf16.msra.mxu0 %v2428_v46 }
 0x81b   :  { %2177 = vmatprep.subr.bf16.mxu0 %v2429_v48 }
 0x81e   :  { %2178 = vmatpush3.bf16.msra.mxu0 %v2430_v49 }
 0x81f   :  { %2179 = vmatprep.subr.bf16.mxu0 %v2431_v50 }
 0x822   :  { %2180 = vmatpush3.bf16.msra.mxu0 %v2432_v52 }
 0x823   :  { %2181 = vmatprep.subr.bf16.mxu0 %v2433_v53 }
 0x826   :  { %2182 = vmatpush3.bf16.msra.mxu0 %v2434_v28 }
 0x827   :  { %2183 = vmatprep.subr.bf16.mxu0 %v2435_v54 }
 0x82a   :  { %2184 = vmatpush3.bf16.msra.mxu0 %v2436_v55 }
 0x82b   :  { %2185 = vmatprep.subr.bf16.mxu0 %v2437_v56 }
 0x82e   :  { %2186 = vmatpush3.bf16.msra.mxu0 %v2438_v57 }
 0x82f   :  { %2187 = vmatprep.subr.bf16.mxu0 %v2439_v58 }
 0x832   :  { %2188 = vmatpush3.bf16.msra.mxu0 %v2440_v59 }
 0x833   :  { %2189 = vmatprep.subr.bf16.mxu0 %v2441_v60 }
 0x836   :  { %2190 = vmatpush3.bf16.msra.mxu0 %v2442_v61 }
 0x837   :  { %2266 = vmatprep.subr.bf16.mxu0 %v2553_v34 }
 0x8e4   :  { %v1219_v9 = vpop.f32.mrb[16].mxu0 }
 0x8e5   :  { %v1325_v11 = vadd.f32 %v1318_v8, %v1219_v9  ;;  %v2238_v12 = vpop.f32.mrb[17].mxu0 }
 0x8e6   :  { %v1222_v13 = vpop.f32.mrb[18].mxu0 }
 0x8e7   :  { %v1327_v14 = vadd.f32 %v1318_v8, %v1222_v13  ;;  %v2239_v15 = vpop.f32.mrb[19].mxu0  ;;  %v1329_v16 = vmax.f32 %v1325_v11, 0.0  ;;  %v1753_v11 = vld [vmem:[%s3156_s20 + $0x8] sm:$0xff]  ;;  %v2451_v13 = vld [vmem:[%s3142_s15] sm:$0xff]  }
 0x8e8   :  { %vm1755_vm3 = vcmp.gt.f32.partialorder %v1753_v11, 0.0 }
 0x8e9   :  { %v1331_v17 = vmax.f32 %v1327_v14, 0.0  ;;  %v1757_v12 = vsel %vm1755_vm3, 1, %v2552_v0 }
 0x8eb   :  { %v1333_v19 = vpack.c.bf16 %v1331_v17, %v1329_v16 }
 0x8ec   :  { %v1306_v21 = vpop.f32.mrb[20].mxu0 }
 0x8ed   :  { %v1326_v22 = vadd.f32 %v1322_v18, %v1306_v21  ;;  %v2244_v23 = vpop.f32.mrb[21].mxu0  ;;  %v2453_v21 = vld [vmem:[%s3142_s15 + $0x10] sm:$0xff]  }
 0x8ee   :  { %v1309_v24 = vpop.f32.mrb[22].mxu0  ;;  %v2455_v23 = vld [vmem:[%s3142_s15 + $0x20] sm:$0xff]  }
 0x8ef   :  { %v1328_v25 = vadd.f32 %v1322_v18, %v1309_v24  ;;  %v2245_v26 = vpop.f32.mrb[23].mxu0  ;;  %v1330_v27 = vmax.f32 %v1326_v22, 0.0  ;;  %v2454_v22 = vld [vmem:[%s3142_s15 + $0x18] sm:$0xff]   ;;  %v2456_v24 = vld [vmem:[%s3142_s15 + $0x28] sm:$0xff]  }
 0x8f0   :  { %v2458_v26 = vld [vmem:[%s3142_s15 + $0x38] sm:$0xff]  }
 0x8f1   :  { %v1332_v29 = vmax.f32 %v1328_v25, 0.0  ;;  %v2457_v25 = vld [vmem:[%s3142_s15 + $0x30] sm:$0xff]  }
 0x8f3   :  { %v1334_v30 = vpack.c.bf16 %v1332_v29, %v1330_v27  ;;  %v2459_v27 = vld [vmem:[%s3144_s17] sm:$0xff]  }
 0x8f5   :  { %1495 = vmatprep.mubr.bf16.mxu0 %v1334_v30  ;;  %v2104_v30 = vld [vmem:[%s3141_s14] ss:$0 sm:$0xff] }
 0x8f6   :  { %1496 = vmatmul.mubr.bf16.vlgmr.msra.gmra.mrb[24].mxu0 %v1333_v19 }
 0x8f7   :  { %2268 = vmatprep.mubr.msk.bf16.mxu0 %vm2556_vm1, %v2553_v34 }
 0x9c9   :  { %v2191_v32 = vpop.f32.mrb[24].mxu0 }
 0x9ca   :  { %v2192_v33 = vpop.f32.mrb[25].mxu0 }
 0x9cb   :  { %v2193_v35 = vadd.f32 %v2192_v33, %v2191_v32  ;;  %v2194_v36 = vpop.f32.mrb[26].mxu0 }
 0x9cc   :  { %v2195_v37 = vpop.f32.mrb[27].mxu0 }
 0x9cd   :  { %v2196_v38 = vadd.f32 %v2195_v37, %v2194_v36 }
 0x9cf   :  { %v1504_v43 = vpack.c.bf16 %v2196_v38, %v2193_v35 }
 0x9d1   :  { %2263 = vmatmul.mubr.bf16.vlgmr.msra.gmra.mrb[16].mxu1 %v1504_v43  ;;  %2267 = vmatpush3.bf16.xpose.msra.mxu0 %v1504_v43 }
 0x9d2   :  { %2273 = vmatpush3.bf16.msra.mxu1 %v1504_v43  ;;  %2274 = vmatprep.mubr.msk.bf16.mxu1 %vm2556_vm1, %v2553_v34 }
 0x9d3   :  { %2278 = vmatprep.subr.bf16.mxu0 %v2553_v34  ;;  %2298 = vmatprep.subr.bf16.mxu1 %v2553_v34 }
 0x9d8   :  { %2269 = vmatmul.mubr.bf16.vlgmr.msra.gmra.mrb[28].mxu0 %v1610_v39 }
 0x9d9   :  { %2294 = vmatprep.mubr.msk.bf16.mxu0 %vm2556_vm1, %v2553_v34  ;;  %2279 = vmatpush3.bf16.msra.mxu0 %v2451_v13 }
 0x9da   :  { %2280 = vmatprep.subr.bf16.mxu0 %v2553_v34 }
 0xaa4   :  { %v1603_v40 = vpop.f32.mrb[16].mxu1 }
 0xaa5   :  { %1653 = vperm.xlu1 %2319, %v1603_v40   ;;  %v2264_v41 = vpop.f32.mrb[17].mxu1 }
 0xaa6   :  { %v1606_v42 = vpop.f32.mrb[18].mxu1 }
 0xaa7   :  { %1658 = vperm.xlu0 %2317, %v1606_v42   ;;  %v2265_v44 = vpop.f32.mrb[19].mxu1 }
 0xaab   :  { %v1645_v45 = vpop.f32.mrb[28].mxu0 }
 0xaac   :  { %v2270_v46 = vpop.f32.mrb[29].mxu0  ;;  %v1664_v49 = vrot.slane %v1645_v45, %v2782_v62 }
 0xaad   :  { %v1648_v47 = vpop.f32.mrb[30].mxu0 }
 0xaae   :  { %v2271_v48 = vpop.f32.mrb[31].mxu0 }
 0xb24   :  { %v1654_v50 = vpop.permute.xlu1 %1653 }
 0xb25   :  { %v1665_v52 = vadd.f32 %v1664_v49, %v1654_v50 }
 0xb26   :  { %v1659_v53 = vpop.permute.xlu0 %1658 }
 0xb27   :  { %v1667_v28 = vmul.f32 0.2, %v1665_v52  ;;  %v1666_v54 = vadd.f32 %v1664_v49, %v1659_v53 }
 0xb29   :  { %v1669_v55 = vmax.f32 %v1665_v52, %v1667_v28  ;;  %v1668_v56 = vmul.f32 0.2, %v1666_v54 }
 0xb2b   :  { %v1670_v57 = vmax.f32 %v1666_v54, %v1668_v56  ;;  %v1671_v58 = vadd.f32 %v2791_v10, %v1669_v55 }
 0xb2d   :  { %v1673_v59 = vsel %vm488_vm0, %v1671_v58, -inf  ;;  %v1672_v60 = vadd.f32 %v2794_v20, %v1670_v57  ;;  %v1752_v20 = vld [vmem:[%s3156_s20] sm:$0xff] }
 0xb2e   :  { %1674 = vmax.xlane.f32.xlu1 %v1673_v59  ;;  %vm1754_vm2 = vcmp.gt.f32.partialorder %v1752_v20, 0.0 }
 0xb2f   :  { %v1676_v61 = vsel %vm488_vm0, %v1672_v60, -inf  ;;  %v1756_v9 = vsel %vm1754_vm2, 1, %v2552_v0 }
 0xb30   :  { %1677 = vmax.xlane.f32.xlu0 %v1676_v61 }
 0xbbb   :  { %v1675_v1 = vpop.xlane.xlu1 %1674 }
 0xbbc   :  { %v1679_v62 = vsub.f32 %v1671_v58, %v1675_v1 }
 0xbbd   :  { %v1678_v2 = vpop.xlane.xlu0 %1677 }
 0xbbe   :  { %v1681_v3 = vmul.f32 1.442695, %v1679_v62  ;;  %v1680_v4 = vsub.f32 %v1672_v60, %v1678_v2  ;;  %v2460_v2 = vld [vmem:[%s3144_s17 + $0x8] sm:$0xff]   ;;  %s2557_s17 = smov [#allocation5]  }
 0xbbf   :  { %s1984_s8 = sshll.u32 %s2557_s17, 4  ;;  %s1985_s8 = int_to_ptr.vmem [resolvable:$true] %s1984_s8 }
 0xbc0   :  { %2493 = vpow2.f32 %v1681_v3  ;;  %v1683_v5 = vmul.f32 1.442695, %v1680_v4  ;;  %v2106_v3 = vld [vmem:[%s3143_s16] ss:$0 sm:$0xff]  ;;  %s2523_s16 = scalar_lea.vmem %s1985_s8, 32  ;;  %p2528_p9 = scmp.lt.s32.totalorder %s1985_s8, %s1985_s8 }
 0xbc1   :  { %p2524_p8 = scmp.ne.s32.totalorder %s1985_s8, %s2523_s16  ;;  %p2529_p10 = scmp.lt.s32.totalorder %s2523_s16, %s2523_s16 }
 0xbc2   :  { %2495 = vpow2.f32 %v1683_v5 }
 0xbc3   :  { %p2530_p11 = por %p2529_p10, %p2528_p9 }
 0xbc5   :  { %p2531_p12 = pnand %p2530_p11, %p2524_p8 }
 0xbca   :  { %v2494_v6 = vpop.eup %2493 }
 0xbcb   :  { %v1685_v7 = vsel %vm488_vm0, %v2494_v6, 0.0 }
 0xbcc   :  { %v2496_v10 = vpop.eup %2495  ;;  %1686 = vadd.xlane.f32.xlu1 %v1685_v7 }
 0xbcd   :  { %v1688_v8 = vsel %vm488_vm0, %v2496_v10, 0.0 }
 0xbce   :  { %1689 = vadd.xlane.f32.xlu0 %v1688_v8 }
 0xbdd   :  { %1759 = vperm.xlu1 %2319, %v1756_v9  }
 0xbe1   :  { %2320 = vset.pattern.permute.xlu1 %v2555_v51 }
 0xbe2   :  { %1776 = vperm.xlu1 %2320, %v1756_v9   ;;  %v2115_v9 = vld [vmem:[%s3145_s18] ss:$0 sm:$0xff] }
 0xbe4   :  { %1762 = vperm.xlu0 %2317, %v1757_v12  }
 0xbe6   :  { %1779 = vperm.xlu1 %2320, %v1757_v12  }
 0xbe8   :  { %2321 = vset.pattern.permute.xlu0 %v2555_v51  ;;  %v2452_v51 = vld [vmem:[%s3142_s15 + $0x8] sm:$0xff]  }
 0xbe9   :  { %2281 = vmatpush3.bf16.msra.mxu0 %v2452_v51 }
 0xbea   :  { %2282 = vmatprep.subr.bf16.mxu0 %v2553_v34 }
 0xbed   :  { %2283 = vmatpush3.bf16.msra.mxu0 %v2453_v21 }
 0xbee   :  { %2284 = vmatprep.subr.bf16.mxu0 %v2553_v34 }
 0xbf1   :  { %2285 = vmatpush3.bf16.msra.mxu0 %v2454_v22 }
 0xbf2   :  { %2286 = vmatprep.subr.bf16.mxu0 %v2553_v34 }
 0xbf5   :  { %2287 = vmatpush3.bf16.msra.mxu0 %v2455_v23 }
 0xbf6   :  { %2288 = vmatprep.subr.bf16.mxu0 %v2553_v34 }
 0xbf9   :  { %2289 = vmatpush3.bf16.msra.mxu0 %v2456_v24 }
 0xbfa   :  { %2290 = vmatprep.subr.bf16.mxu0 %v2553_v34 }
 0xbfd   :  { %2291 = vmatpush3.bf16.msra.mxu0 %v2457_v25 }
 0xbfe   :  { %2292 = vmatprep.subr.bf16.mxu0 %v2553_v34 }
 0xc01   :  { %2293 = vmatpush3.bf16.msra.mxu0 %v2458_v26 }
 0xc59   :  { %v1687_v14 = vpop.xlane.xlu1 %1686 }
 0xc5a   :  { %2497 = vrcp.f32 %v1687_v14 }
 0xc5b   :  { %v1690_v15 = vpop.xlane.xlu0 %1689 }
 0xc5c   :  { %2499 = vrcp.f32 %v1690_v15 }
 0xc5d   :  { %v1760_v29 = vpop.permute.xlu1 %1759 }
 0xc5e   :  { %vm1764_vm4 = vcmp.eq.s32.totalorder %v1760_v29, 1 }
 0xc61   :  { %v1777_v32 = vpop.permute.xlu1 %1776 }
 0xc62   :  { %vm1781_vm6 = vcmp.eq.s32.totalorder %v1777_v32, 1 }
 0xc63   :  { %v1763_v39 = vpop.permute.xlu0 %1762 }
 0xc64   :  { %v2498_v16 = vpop.eup %2497  ;;  %vm1765_vm5 = vcmp.eq.s32.totalorder %v1763_v39, 1 }
 0xc65   :  { %v1693_v17 = vmul.f32 %v2498_v16, %v2494_v6  ;;  %v1780_v41 = vpop.permute.xlu1 %1779 }
 0xc66   :  { %v2500_v0 = vpop.eup %2499  ;;  %vm1782_vm7 = vcmp.eq.s32.totalorder %v1780_v41, 1 }
 0xc67   :  { %v1694_v18 = vmul.f32 %v2500_v0, %v2496_v10 }
 0xc69   :  { %v1695_v19 = vpack.c.bf16 %v1694_v18, %v1693_v17 }
 0xc6b   :  { %2275 = vmatmul.mubr.msk.bf16.vlgmr.msra.gmra.mrb[20].mxu1 %vm488_vm0, %v1695_v19 }
 0xc6c   :  { %2302 = vmatprep.mubr.msk.bf16.mxu1 %vm2556_vm1, %v2553_v34  ;;  %2299 = vmatpush3.bf16.msra.mxu1 %v2459_v27 }
 0xc6d   :  { %2300 = vmatprep.subr.bf16.mxu1 %v2553_v34 }
 0xc70   :  { %2301 = vmatpush3.bf16.msra.mxu1 %v2460_v2 }
 0xd3e   :  { %v1740_v31 = vpop.f32.mrb[20].mxu1 }
 0xd3f   :  { %v1741_v63 = vadd.f32 %v2104_v30, %v1740_v31  ;;  %v2276_v33 = vpop.f32.mrb[21].mxu1 }
 0xd40   :  { %v1743_v35 = vpop.f32.mrb[22].mxu1 }
 0xd41   :  { %v1744_v36 = vadd.f32 %v2104_v30, %v1743_v35  ;;  %v2277_v37 = vpop.f32.mrb[23].mxu1  ;;  %v1747_v38 = vmax.f32 %v1741_v63, 0.0 }
 0xd43   :  { %v1748_v43 = vmax.f32 %v1744_v36, 0.0 }
 0xd45   :  { %v1749_v40 = vpack.c.bf16 %v1748_v43, %v1747_v38 }
 0xd47   :  { %v1750_v42 = vunpack.c.l.bf16 %v1749_v40  ;;  %v1751_v44 = vunpack.c.h.bf16 %v1749_v40 }
 0xd49   :  { %v1766_v34 = vsel %vm1764_vm4, %v1750_v42, -1e+30  ;;  %v1767_v45 = vsel %vm1765_vm5, %v1751_v44, -1e+30  ;;  %v1783_v46 = vsel %vm1781_vm6, %v1750_v42, -1e+30 }
 0xd4a   :  { %v1768_v47 = vmax.f32 %v1766_v34, %v1767_v45  ;;  %v1784_v48 = vsel %vm1782_vm7, %v1751_v44, -1e+30 }
 0xd4b   :  { %v1785_v49 = vmax.f32 %v1783_v46, %v1784_v48 }
 0xd4c   :  { %v1769_v50 = vrot.slane %v1768_v47, 4 }
 0xd4d   :  { %v1786_v52 = vrot.slane %v1785_v49, 4 }
 0xd4e   :  { %v1770_v53 = vmax.f32 %v1768_v47, %v1769_v50 }
 0xd4f   :  { %v1787_v28 = vmax.f32 %v1785_v49, %v1786_v52 }
 0xd50   :  { %v1771_v54 = vrot.slane %v1770_v53, 2 }
 0xd51   :  { %v1788_v55 = vrot.slane %v1787_v28, 2 }
 0xd52   :  { %v1772_v56 = vmax.f32 %v1770_v53, %v1771_v54 }
 0xd53   :  { %v1789_v57 = vmax.f32 %v1787_v28, %v1788_v55 }
 0xd54   :  { %v1773_v58 = vrot.slane %v1772_v56, 1 }
 0xd55   :  { %v1790_v59 = vrot.slane %v1789_v57, 1 }
 0xd56   :  { %v1774_v60 = vmax.f32 %v1772_v56, %v1773_v58 }
 0xd57   :  { %v1791_v61 = vmax.f32 %v1789_v57, %v1790_v59 }
 0xd59   :  { %v1793_v1 = vsel %vm1792_vm8, %v1774_v60, %v1791_v61 }
 0xd5a   :  { %v1794_v62 = vpack.c.bf16 %v1793_v1, %v1793_v1 }
 0xd5c   :  { %2295 = vmatmul.mubr.bf16.vlgmr.msra.gmra.mrb[32].mxu0 %v1794_v62 }
 0xe2f   :  { %v1900_v4 = vpop.f32.mrb[32].mxu0 }
 0xe30   :  { %v1901_v5 = vadd.f32 %v2106_v3, %v1900_v4  ;;  %v2296_v6 = vpop.f32.mrb[33].mxu0 }
 0xe31   :  { %v1903_v7 = vpop.f32.mrb[34].mxu0 }
 0xe32   :  { %v1906_v10 = vmax.f32 %v1901_v5, 0.0  ;;  %v2297_v8 = vpop.f32.mrb[35].mxu0 }
 0xe34   :  { %v1907_v20 = vpack.c.bf16 %v1906_v10, %v1906_v10 }
 0xe36   :  { %2303 = vmatmul.mubr.msk.bf16.vlgmr.msra.gmra.mrb[24].mxu1 %vm1931_vm9, %v1907_v20 }
 0xf09   :  { %v1969_v11 = vpop.f32.mrb[24].mxu1 }
 0xf0a   :  { %v1970_v12 = vadd.f32 %v2115_v9, %v1969_v11  ;;  %v2304_v13 = vpop.f32.mrb[25].mxu1 }
 0xf0b   :  { %v1972_v14 = vpop.f32.mrb[26].mxu1 }
 0xf0c   :  { %v1975_v15 = vmax.f32 %v1970_v12, 0.0  ;;  %v2305_v16 = vpop.f32.mrb[27].mxu1 }
 0xf0e   :  { %1977 = vst.msk [vmem:[#allocation5] sm:$0x3] %vm1976_vm10, %v1975_v15 }
 0xf0f   :  { %2534 = shalt.err (!%p2531_p12)
}
 0xf10   :  { %s2535_s28 = scalar_lea.hbm %s3146_s19, 32 }
 0xf11   :  { %p2536_p13 = scmp.ne.s32.totalorder %s3146_s19, %s2535_s28  ;;  %p2539_p0 = scmp.lt.u32.totalorder %s2535_s28, %s3146_s19 }
 0xf13   :  { %p2541_p1 = pnand %p2539_p0, %p2536_p13 }
 0xf15   :  { %2544 = shalt.err (!%p2541_p1)
}
 0xf16   :  { %1987 = dma.vmem_to_hbm [thread:$0]  %s1985_s8, 32, %s3146_s19, [#allocation4]  }
 0xf17   :  { %2547 = dma.done.wait [#allocation4], 32  }
 0xf18   :  { %2548 = vsyncadd [#allocation4], 4294967264 }
 0xf19   :  { %1991 = vsyncpa [#allocation3], 1 }
 0xf1a   :  { %1992 = vsyncpa [#allocation4], 1 }

</bundles_post_ra>
